<compile_context>
chip_gen: v7x
topology: tpu7x:2x2x1
jax: 0.10.0
libtpu: 0.0.40
codegen_flags: <defaults>
</compile_context>

<pallas_src>
import math
import jax
import jax.numpy as jnp
from jax.experimental import pallas as pl
from jax.experimental.pallas import tpu as pltpu

FEATURE = 32
HEADS = 4
HEAD_DIM = FEATURE // HEADS
FFN_HIDDEN = 64
TGT_LEN = 8
SRC_LEN = 16
BATCH = 2
EPS = 1e-6
MASK_PENALTY = 1e9          # additive mask: (mask - 1) * 1e9  -> 0 keep, -1e9 masked

# MXU operand dtype.  Flip to jnp.bfloat16 on v6e/v7x for the native-MXU fast
# path (halves operand vreg traffic); accumulation stays f32 either way.  Kept
# at f32 here so the strict parity check against the f32 reference holds.
MXU_DTYPE = jnp.float32


# ----------------------------- kernel helpers ------------------------------
def _dot(a, b):
    return jnp.dot(a.astype(MXU_DTYPE), b.astype(MXU_DTYPE),
                   preferred_element_type=jnp.float32)


def _bmm(eq, a, b):
    return jnp.einsum(eq, a.astype(MXU_DTYPE), b.astype(MXU_DTYPE),
                      preferred_element_type=jnp.float32)


def _layernorm(x, w, b):
    # matches torch LayerNorm in the module: unbiased std (N-1), divide by (std + eps)
    n = x.shape[-1]
    mean = jnp.mean(x, axis=-1, keepdims=True)
    var = jnp.sum((x - mean) ** 2, axis=-1, keepdims=True) * (1.0 / (n - 1))
    std = jnp.sqrt(var)
    return w * (x - mean) / (std + EPS) + b


def _softmax_last(s):
    m = jnp.max(s, axis=-1, keepdims=True)
    e = jnp.exp(s - m)
    return e * pl.reciprocal(jnp.sum(e, axis=-1, keepdims=True), approx=True)


def _mha(q_in, kv_in, bias, batch, lq, lk, w, b, *, fused_qkv):
    """Multi-head attention on batch-flattened activations.

    q_in : (batch*lq, F)   kv_in : (batch*lk, F)
    bias : additive mask broadcastable to (batch, lq, lk)
    w    : (F, 4F) = [Wq | Wk | Wv | Wo]     b : (1, 4F)
    """
    F = FEATURE
    if fused_qkv:                      # self-attention: one fused QKV matmul
        qkv = _dot(q_in, w[:, :3 * F]) + b[:, :3 * F]
        q, k, v = qkv[:, :F], qkv[:, F:2 * F], qkv[:, 2 * F:3 * F]
    else:                              # cross-attention: Q from decoder, fused KV from memory
        q = _dot(q_in, w[:, :F]) + b[:, :F]
        kv = _dot(kv_in, w[:, F:3 * F]) + b[:, F:3 * F]
        k, v = kv[:, :F], kv[:, F:]
    wo = w[:, 3 * F:]                  # (F, F)
    bo = b[:, 3 * F:]                  # (1, F)

    q3 = q.reshape(batch, lq, F)       # leading-dim split: free
    k3 = k.reshape(batch, lk, F)
    v3 = v.reshape(batch, lk, F)

    scale = 1.0 / math.sqrt(HEAD_DIM)
    out = None
    for h in range(HEADS):             # static loop; each step batched over `batch`
        sl = slice(h * HEAD_DIM, (h + 1) * HEAD_DIM)
        s = _bmm('bqd,bkd->bqk', q3[:, :, sl], k3[:, :, sl]) * scale + bias
        p = _softmax_last(s)
        ctx = _bmm('bqk,bkd->bqd', p, v3[:, :, sl])          # (batch, lq, hd)
        # accumulate output projection per head: avoids a lane-wise concatenate
        part = _dot(ctx.reshape(batch * lq, HEAD_DIM), wo[sl, :])
        out = part if out is None else out + part
    return out + bo


# -------------------------------- kernel -----------------------------------
def decoder_layer_kernel(x_ref, mem_ref, tgt_bias_ref, src_bias_ref,
                         attn_w_ref, attn_b_ref, ln_w_ref, ln_b_ref,
                         w1_ref, b1_ref, w2_ref, b2_ref, out_ref):
    B, T, F = x_ref.shape
    S = mem_ref.shape[1]

    # hoisted loads: every parameter / mask read exactly once
    x = x_ref[...].reshape(B * T, F)          # (B*T, F)
    mem = mem_ref[...].reshape(B * S, F)      # (B*S, F)
    tgt_bias = tgt_bias_ref[...]              # (B, T, T) additive
    src_bias = src_bias_ref[...]              # (B, 1, S) additive
    attn_w = attn_w_ref[...]                  # (2, F, 4F)  [self, cross]
    attn_b = attn_b_ref[...]                  # (2, 1, 4F)
    ln_w = ln_w_ref[...]                      # (3, F)
    ln_b = ln_b_ref[...]                      # (3, F)
    w1 = w1_ref[...]; b1 = b1_ref[...]
    w2 = w2_ref[...]; b2 = b2_ref[...]

    # sublayer 0: masked self-attention (dropout == identity)
    n0 = _layernorm(x, ln_w[0:1, :], ln_b[0:1, :])
    x = x + _mha(n0, n0, tgt_bias, B, T, T, attn_w[0], attn_b[0], fused_qkv=True)

    # sublayer 1: encoder-decoder attention
    n1 = _layernorm(x, ln_w[1:2, :], ln_b[1:2, :])
    x = x + _mha(n1, mem, src_bias, B, T, S, attn_w[1], attn_b[1], fused_qkv=False)

    # sublayer 2: position-wise feed forward
    n2 = _layernorm(x, ln_w[2:3, :], ln_b[2:3, :])
    h = jnp.maximum(_dot(n2, w1) + b1, 0.0)
    x = x + (_dot(h, w2) + b2)

    out_ref[...] = x.reshape(B, T, F)


# -------------------------------- wrapper -----------------------------------
def pack_params(p):
    """Pack per-attention weights into lane-dense (F, 4F) = (32, 128) slabs."""
    aw, ab = p["attn_w"], p["attn_b"]                      # (8,F,F), (8,F)
    w_self = jnp.concatenate([aw[0], aw[1], aw[2], aw[3]], axis=1)    # (F, 4F)
    w_cross = jnp.concatenate([aw[4], aw[5], aw[6], aw[7]], axis=1)   # (F, 4F)
    b_self = jnp.concatenate([ab[0], ab[1], ab[2], ab[3]], axis=0)[None, :]
    b_cross = jnp.concatenate([ab[4], ab[5], ab[6], ab[7]], axis=0)[None, :]
    return {
        "attn_w": jnp.stack([w_self, w_cross]),            # (2, F, 4F)
        "attn_b": jnp.stack([b_self, b_cross]),            # (2, 1, 4F)
        "ln_w": p["ln_w"], "ln_b": p["ln_b"],
        "w1": p["w1"], "b1": p["b1"], "w2": p["w2"], "b2": p["b2"],
    }


def decoder_layer(x, memory, src_mask, tgt_mask, packed):
    B, T, F_ = x.shape
    S = memory.shape[1]
    # additive masks precomputed outside the kernel: 0 where keep, -1e9 where masked
    tgt_bias = (tgt_mask - 1.0) * MASK_PENALTY              # (B, T, T)
    src_bias = (src_mask - 1.0) * MASK_PENALTY              # (B, 1, S)

    return pl.pallas_call(
        decoder_layer_kernel,
        out_shape=jax.ShapeDtypeStruct((B, T, F_), jnp.float32),
        grid_spec=pltpu.PrefetchScalarGridSpec(
            num_scalar_prefetch=0,
            grid=(1,),                                      # one invocation; batch folded inside
            in_specs=[
                pl.BlockSpec((B, T, F_), lambda i: (0, 0, 0)),        # x
                pl.BlockSpec((B, S, F_), lambda i: (0, 0, 0)),        # memory
                pl.BlockSpec((B, T, T), lambda i: (0, 0, 0)),         # tgt additive mask
                pl.BlockSpec((B, 1, S), lambda i: (0, 0, 0)),         # src additive mask
                pl.BlockSpec((2, F_, 4 * F_), lambda i: (0, 0, 0)),   # packed attn weights
                pl.BlockSpec((2, 1, 4 * F_), lambda i: (0, 0, 0)),    # packed attn biases
                pl.BlockSpec((3, F_), lambda i: (0, 0)),              # LN gains
                pl.BlockSpec((3, F_), lambda i: (0, 0)),              # LN biases
                pl.BlockSpec((F_, FFN_HIDDEN), lambda i: (0, 0)),     # ffn W1
                pl.BlockSpec((1, FFN_HIDDEN), lambda i: (0, 0)),      # ffn b1
                pl.BlockSpec((FFN_HIDDEN, F_), lambda i: (0, 0)),     # ffn W2
                pl.BlockSpec((1, F_), lambda i: (0, 0)),              # ffn b2
            ],
            out_specs=pl.BlockSpec((B, T, F_), lambda i: (0, 0, 0)),
        ),
        compiler_params=pltpu.CompilerParams(
            dimension_semantics=("arbitrary",)),
    )(x, memory, tgt_bias, src_bias,
      packed["attn_w"], packed["attn_b"], packed["ln_w"], packed["ln_b"],
      packed["w1"], packed["b1"], packed["w2"], packed["b2"])


# --------------------------- pure-JAX reference ------------------------------
def reference(x, memory, src_mask, tgt_mask, p):
    def ln(z, w, b):
        mean = z.mean(-1, keepdims=True)
        var = ((z - mean) ** 2).sum(-1, keepdims=True) / (z.shape[-1] - 1)
        return w * (z - mean) / (jnp.sqrt(var) + EPS) + b

    def mha(q_in, kv_in, mask, ws, bs):
        q = q_in @ ws[0] + bs[0]
        k = kv_in @ ws[1] + bs[1]
        v = kv_in @ ws[2] + bs[2]
        B_, Lq, _ = q.shape
        Lk = k.shape[1]
        qh = q.reshape(B_, Lq, HEADS, HEAD_DIM).transpose(0, 2, 1, 3)
        kh = k.reshape(B_, Lk, HEADS, HEAD_DIM).transpose(0, 2, 1, 3)
        vh = v.reshape(B_, Lk, HEADS, HEAD_DIM).transpose(0, 2, 1, 3)
        s = qh @ kh.transpose(0, 1, 3, 2) / math.sqrt(HEAD_DIM)
        s = jnp.where(mask[:, None] == 0.0, -MASK_PENALTY, s)
        a = jax.nn.softmax(s, axis=-1)
        o = (a @ vh).transpose(0, 2, 1, 3).reshape(B_, Lq, FEATURE)
        return o @ ws[3] + bs[3]

    aw, ab = p["attn_w"], p["attn_b"]
    lw, lb = p["ln_w"], p["ln_b"]
    n0 = ln(x, lw[0], lb[0])
    x = x + mha(n0, n0, tgt_mask, aw[0:4], ab[0:4])
    n1 = ln(x, lw[1], lb[1])
    x = x + mha(n1, memory, src_mask, aw[4:8], ab[4:8])
    n2 = ln(x, lw[2], lb[2])
    x = x + (jnp.maximum(n2 @ p["w1"] + p["b1"][0], 0.0) @ p["w2"] + p["b2"][0])
    return x


if __name__ == "__main__":
    key = jax.random.PRNGKey(0)
    keys = jax.random.split(key, 8)

    x = jax.random.normal(keys[0], (BATCH, TGT_LEN, FEATURE), jnp.float32)
    memory = jax.random.normal(keys[1], (BATCH, SRC_LEN, FEATURE), jnp.float32)
    src_mask = jnp.ones((BATCH, 1, SRC_LEN), jnp.float32)
    tgt_mask = jnp.broadcast_to(
        jnp.tril(jnp.ones((TGT_LEN, TGT_LEN), jnp.float32)),
        (BATCH, TGT_LEN, TGT_LEN))

    params = {
        "attn_w": 0.1 * jax.random.normal(keys[2], (8, FEATURE, FEATURE), jnp.float32),
        "attn_b": 0.05 * jax.random.normal(keys[3], (8, FEATURE), jnp.float32),
        "ln_w": jnp.ones((3, FEATURE), jnp.float32),    # LayerNorm init: ones / zeros
        "ln_b": jnp.zeros((3, FEATURE), jnp.float32),
        "w1": 0.1 * jax.random.normal(keys[4], (FEATURE, FFN_HIDDEN), jnp.float32),
        "b1": 0.05 * jax.random.normal(keys[5], (1, FFN_HIDDEN), jnp.float32),
        "w2": 0.1 * jax.random.normal(keys[6], (FFN_HIDDEN, FEATURE), jnp.float32),
        "b2": 0.05 * jax.random.normal(keys[7], (1, FEATURE), jnp.float32),
    }

    packed = pack_params(params)                    # one-time weight repacking
    out = decoder_layer(x, memory, src_mask, tgt_mask, packed)
    out = jax.block_until_ready(out)

    ref = reference(x, memory, src_mask, tgt_mask, params)
    assert out.shape == (BATCH, TGT_LEN, FEATURE)
    # 1e-2 tolerance covers the approx-reciprocal softmax normalization (and bf16
    # MXU operands if MXU_DTYPE is flipped); wiring errors would be O(0.1 - 1).
    assert jnp.allclose(out, ref, rtol=1e-2, atol=1e-2), "mismatch vs JAX reference"

    # TODO(synk): dropout layers are identity here (inference semantics); stochastic
    # dropout would use pltpu.prng_seed / pltpu.stateful_bernoulli.
    print("KERNEL_OK")
</pallas_src>

<mosaic_0001>
module attributes {stable_mosaic.version = 11 : i64} {
  func.func @decoder_layer_kernel(%arg0: i32, %arg1: memref<2x8x32xf32, #tpu.memory_space<vmem>>, %arg2: memref<2x16x32xf32, #tpu.memory_space<vmem>>, %arg3: memref<2x8x8xf32, #tpu.memory_space<vmem>>, %arg4: memref<2x1x16xf32, #tpu.memory_space<vmem>>, %arg5: memref<2x32x128xf32, #tpu.memory_space<vmem>>, %arg6: memref<2x1x128xf32, #tpu.memory_space<vmem>>, %arg7: memref<3x32xf32, #tpu.memory_space<vmem>>, %arg8: memref<3x32xf32, #tpu.memory_space<vmem>>, %arg9: memref<32x64xf32, #tpu.memory_space<vmem>>, %arg10: memref<1x64xf32, #tpu.memory_space<vmem>>, %arg11: memref<64x32xf32, #tpu.memory_space<vmem>>, %arg12: memref<1x32xf32, #tpu.memory_space<vmem>>, %arg13: memref<2x8x32xf32, #tpu.memory_space<vmem>>) attributes {dimension_semantics = [#tpu.dimension_semantics<arbitrary>], iteration_bounds = array<i64: 1>, scalar_prefetch = 0 : i64, scratch_operands = 0 : i64, tpu.core_type = #tpu.core_type<tc>, window_params = [{pipeline_mode = #tpu.pipeline_mode<synchronous>, transform_indices = @transform_0, window_bounds = array<i64: 2, 8, 32>}, {pipeline_mode = #tpu.pipeline_mode<synchronous>, transform_indices = @transform_1, window_bounds = array<i64: 2, 16, 32>}, {pipeline_mode = #tpu.pipeline_mode<synchronous>, transform_indices = @transform_2, window_bounds = array<i64: 2, 8, 8>}, {pipeline_mode = #tpu.pipeline_mode<synchronous>, transform_indices = @transform_3, window_bounds = array<i64: 2, 1, 16>}, {pipeline_mode = #tpu.pipeline_mode<synchronous>, transform_indices = @transform_4, window_bounds = array<i64: 2, 32, 128>}, {pipeline_mode = #tpu.pipeline_mode<synchronous>, transform_indices = @transform_5, window_bounds = array<i64: 2, 1, 128>}, {pipeline_mode = #tpu.pipeline_mode<synchronous>, transform_indices = @transform_6, window_bounds = array<i64: 3, 32>}, {pipeline_mode = #tpu.pipeline_mode<synchronous>, transform_indices = @transform_7, window_bounds = array<i64: 3, 32>}, {pipeline_mode = #tpu.pipeline_mode<synchronous>, transform_indices = @transform_8, window_bounds = array<i64: 32, 64>}, {pipeline_mode = #tpu.pipeline_mode<synchronous>, transform_indices = @transform_9, window_bounds = array<i64: 1, 64>}, {pipeline_mode = #tpu.pipeline_mode<synchronous>, transform_indices = @transform_10, window_bounds = array<i64: 64, 32>}, {pipeline_mode = #tpu.pipeline_mode<synchronous>, transform_indices = @transform_11, window_bounds = array<i64: 1, 32>}, {pipeline_mode = #tpu.pipeline_mode<synchronous>, transform_indices = @transform_12, window_bounds = array<i64: 2, 8, 32>}]} {
    %c0 = arith.constant 0 : index
    %c0_0 = arith.constant 0 : index
    %c0_1 = arith.constant 0 : index
    %0 = vector.load %arg1[%c0, %c0_0, %c0_1] : memref<2x8x32xf32, #tpu.memory_space<vmem>>, vector<2x8x32xf32>
    %1 = vector.shape_cast %0 : vector<2x8x32xf32> to vector<16x32xf32>
    %c0_2 = arith.constant 0 : index
    %c0_3 = arith.constant 0 : index
    %c0_4 = arith.constant 0 : index
    %2 = vector.load %arg2[%c0_2, %c0_3, %c0_4] : memref<2x16x32xf32, #tpu.memory_space<vmem>>, vector<2x16x32xf32>
    %3 = vector.shape_cast %2 : vector<2x16x32xf32> to vector<32x32xf32>
    %c0_5 = arith.constant 0 : index
    %c0_6 = arith.constant 0 : index
    %c0_7 = arith.constant 0 : index
    %4 = vector.load %arg3[%c0_5, %c0_6, %c0_7] : memref<2x8x8xf32, #tpu.memory_space<vmem>>, vector<2x8x8xf32>
    %c0_8 = arith.constant 0 : index
    %c0_9 = arith.constant 0 : index
    %c0_10 = arith.constant 0 : index
    %5 = vector.load %arg4[%c0_8, %c0_9, %c0_10] : memref<2x1x16xf32, #tpu.memory_space<vmem>>, vector<2x1x16xf32>
    %c0_11 = arith.constant 0 : index
    %c0_12 = arith.constant 0 : index
    %c0_13 = arith.constant 0 : index
    %6 = vector.load %arg5[%c0_11, %c0_12, %c0_13] : memref<2x32x128xf32, #tpu.memory_space<vmem>>, vector<2x32x128xf32>
    %c0_14 = arith.constant 0 : index
    %c0_15 = arith.constant 0 : index
    %c0_16 = arith.constant 0 : index
    %7 = vector.load %arg6[%c0_14, %c0_15, %c0_16] : memref<2x1x128xf32, #tpu.memory_space<vmem>>, vector<2x1x128xf32>
    %c0_17 = arith.constant 0 : index
    %c0_18 = arith.constant 0 : index
    %8 = vector.load %arg7[%c0_17, %c0_18] : memref<3x32xf32, #tpu.memory_space<vmem>>, vector<3x32xf32>
    %c0_19 = arith.constant 0 : index
    %c0_20 = arith.constant 0 : index
    %9 = vector.load %arg8[%c0_19, %c0_20] : memref<3x32xf32, #tpu.memory_space<vmem>>, vector<3x32xf32>
    %c0_21 = arith.constant 0 : index
    %c0_22 = arith.constant 0 : index
    %10 = vector.load %arg9[%c0_21, %c0_22] : memref<32x64xf32, #tpu.memory_space<vmem>>, vector<32x64xf32>
    %c0_23 = arith.constant 0 : index
    %c0_24 = arith.constant 0 : index
    %11 = vector.load %arg10[%c0_23, %c0_24] : memref<1x64xf32, #tpu.memory_space<vmem>>, vector<1x64xf32>
    %c0_25 = arith.constant 0 : index
    %c0_26 = arith.constant 0 : index
    %12 = vector.load %arg11[%c0_25, %c0_26] : memref<64x32xf32, #tpu.memory_space<vmem>>, vector<64x32xf32>
    %c0_27 = arith.constant 0 : index
    %c0_28 = arith.constant 0 : index
    %13 = vector.load %arg12[%c0_27, %c0_28] : memref<1x32xf32, #tpu.memory_space<vmem>>, vector<1x32xf32>
    %14 = vector.extract_strided_slice %8 {offsets = [0, 0], sizes = [1, 32], strides = [1, 1]} : vector<3x32xf32> to vector<1x32xf32>
    %15 = vector.extract_strided_slice %9 {offsets = [0, 0], sizes = [1, 32], strides = [1, 1]} : vector<3x32xf32> to vector<1x32xf32>
    %cst = arith.constant dense<0.000000e+00> : vector<16xf32>
    %16 = vector.multi_reduction <add>, %1, %cst [1] : vector<16x32xf32> to vector<16xf32>
    %17 = vector.shape_cast %16 : vector<16xf32> to vector<16x1xf32>
    %cst_29 = arith.constant 3.200000e+01 : f32
    %18 = vector.broadcast %cst_29 : f32 to vector<16x1xf32>
    %19 = arith.divf %17, %18 : vector<16x1xf32>
    %20 = vector.broadcast %19 : vector<16x1xf32> to vector<16x32xf32>
    %21 = arith.subf %1, %20 : vector<16x32xf32>
    %22 = arith.mulf %21, %21 : vector<16x32xf32>
    %cst_30 = arith.constant dense<0.000000e+00> : vector<16xf32>
    %23 = vector.multi_reduction <add>, %22, %cst_30 [1] : vector<16x32xf32> to vector<16xf32>
    %24 = vector.shape_cast %23 : vector<16xf32> to vector<16x1xf32>
    %cst_31 = arith.constant 0.0322580636 : f32
    %25 = vector.broadcast %cst_31 : f32 to vector<16x1xf32>
    %26 = arith.mulf %24, %25 : vector<16x1xf32>
    %27 = math.sqrt %26 : vector<16x1xf32>
    %28 = vector.broadcast %19 : vector<16x1xf32> to vector<16x32xf32>
    %29 = arith.subf %1, %28 : vector<16x32xf32>
    %30 = vector.broadcast %14 : vector<1x32xf32> to vector<16x32xf32>
    %31 = arith.mulf %30, %29 : vector<16x32xf32>
    %cst_32 = arith.constant 9.99999997E-7 : f32
    %32 = vector.broadcast %cst_32 : f32 to vector<16x1xf32>
    %33 = arith.addf %27, %32 : vector<16x1xf32>
    %34 = vector.broadcast %33 : vector<16x1xf32> to vector<16x32xf32>
    %35 = arith.divf %31, %34 : vector<16x32xf32>
    %36 = vector.broadcast %15 : vector<1x32xf32> to vector<16x32xf32>
    %37 = arith.addf %35, %36 : vector<16x32xf32>
    %38 = vector.extract_strided_slice %6 {offsets = [0, 0, 0], sizes = [1, 32, 128], strides = [1, 1, 1]} : vector<2x32x128xf32> to vector<1x32x128xf32>
    %39 = vector.shape_cast %38 : vector<1x32x128xf32> to vector<32x128xf32>
    %40 = vector.extract_strided_slice %7 {offsets = [0, 0, 0], sizes = [1, 1, 128], strides = [1, 1, 1]} : vector<2x1x128xf32> to vector<1x1x128xf32>
    %41 = vector.shape_cast %40 : vector<1x1x128xf32> to vector<1x128xf32>
    %42 = vector.extract_strided_slice %39 {offsets = [0, 0], sizes = [32, 96], strides = [1, 1]} : vector<32x128xf32> to vector<32x96xf32>
    %cst_33 = arith.constant dense<0.000000e+00> : vector<16x96xf32>
    %43 = tpu.matmul %37, %42, %cst_33 {dimension_numbers = #tpu.dot_dimension_numbers<[1], [0], [0], [1], [0, 0, 1, 1], [], []>} : vector<16x32xf32>, vector<32x96xf32>, vector<16x96xf32> -> vector<16x96xf32>
    %44 = vector.extract_strided_slice %41 {offsets = [0, 0], sizes = [1, 96], strides = [1, 1]} : vector<1x128xf32> to vector<1x96xf32>
    %45 = vector.broadcast %44 : vector<1x96xf32> to vector<16x96xf32>
    %46 = arith.addf %43, %45 : vector<16x96xf32>
    %47 = vector.extract_strided_slice %46 {offsets = [0, 0], sizes = [16, 32], strides = [1, 1]} : vector<16x96xf32> to vector<16x32xf32>
    %48 = vector.extract_strided_slice %46 {offsets = [0, 32], sizes = [16, 32], strides = [1, 1]} : vector<16x96xf32> to vector<16x32xf32>
    %49 = vector.extract_strided_slice %46 {offsets = [0, 64], sizes = [16, 32], strides = [1, 1]} : vector<16x96xf32> to vector<16x32xf32>
    %50 = vector.extract_strided_slice %39 {offsets = [0, 96], sizes = [32, 32], strides = [1, 1]} : vector<32x128xf32> to vector<32x32xf32>
    %51 = vector.extract_strided_slice %41 {offsets = [0, 96], sizes = [1, 32], strides = [1, 1]} : vector<1x128xf32> to vector<1x32xf32>
    %52 = vector.shape_cast %47 : vector<16x32xf32> to vector<2x8x32xf32>
    %53 = vector.shape_cast %48 : vector<16x32xf32> to vector<2x8x32xf32>
    %54 = vector.shape_cast %49 : vector<16x32xf32> to vector<2x8x32xf32>
    %55 = vector.extract_strided_slice %52 {offsets = [0, 0, 0], sizes = [2, 8, 8], strides = [1, 1, 1]} : vector<2x8x32xf32> to vector<2x8x8xf32>
    %56 = vector.extract_strided_slice %53 {offsets = [0, 0, 0], sizes = [2, 8, 8], strides = [1, 1, 1]} : vector<2x8x32xf32> to vector<2x8x8xf32>
    "tpu.trace_start"() <{level = 10 : i32, message = "bqd,bkd->bqk"}> : () -> ()
    %cst_34 = arith.constant dense<0.000000e+00> : vector<2x8x8xf32>
    %57 = tpu.matmul %55, %56, %cst_34 {dimension_numbers = #tpu.dot_dimension_numbers<[2], [2], [1], [1], [0, 0, 0, 1, 1, 1], [0], [0]>} : vector<2x8x8xf32>, vector<2x8x8xf32>, vector<2x8x8xf32> -> vector<2x8x8xf32>
    "tpu.trace_stop"() : () -> ()
    %cst_35 = arith.constant 0.353553385 : f32
    %58 = vector.broadcast %cst_35 : f32 to vector<2x8x8xf32>
    %59 = arith.mulf %57, %58 : vector<2x8x8xf32>
    %60 = arith.addf %59, %4 : vector<2x8x8xf32>
    %cst_36 = arith.constant dense<0xFF800000> : vector<2x8xf32>
    %61 = vector.multi_reduction <maximumf>, %60, %cst_36 [2] : vector<2x8x8xf32> to vector<2x8xf32>
    %62 = vector.shape_cast %61 : vector<2x8xf32> to vector<2x8x1xf32>
    %63 = vector.broadcast %62 : vector<2x8x1xf32> to vector<2x8x8xf32>
    %64 = arith.subf %60, %63 : vector<2x8x8xf32>
    %65 = math.exp %64 : vector<2x8x8xf32>
    %cst_37 = arith.constant dense<0.000000e+00> : vector<2x8xf32>
    %66 = vector.multi_reduction <add>, %65, %cst_37 [2] : vector<2x8x8xf32> to vector<2x8xf32>
    %67 = vector.shape_cast %66 : vector<2x8xf32> to vector<2x8x1xf32>
    %68 = tpu.reciprocal %67 {approx = true} : vector<2x8x1xf32> -> vector<2x8x1xf32>
    %69 = vector.broadcast %68 : vector<2x8x1xf32> to vector<2x8x8xf32>
    %70 = arith.mulf %65, %69 : vector<2x8x8xf32>
    %71 = vector.extract_strided_slice %54 {offsets = [0, 0, 0], sizes = [2, 8, 8], strides = [1, 1, 1]} : vector<2x8x32xf32> to vector<2x8x8xf32>
    "tpu.trace_start"() <{level = 10 : i32, message = "bqk,bkd->bqd"}> : () -> ()
    %cst_38 = arith.constant dense<0.000000e+00> : vector<2x8x8xf32>
    %72 = tpu.matmul %70, %71, %cst_38 {dimension_numbers = #tpu.dot_dimension_numbers<[2], [1], [1], [2], [0, 0, 0, 1, 1, 2], [0], [0]>} : vector<2x8x8xf32>, vector<2x8x8xf32>, vector<2x8x8xf32> -> vector<2x8x8xf32>
    "tpu.trace_stop"() : () -> ()
    %73 = vector.shape_cast %72 : vector<2x8x8xf32> to vector<16x8xf32>
    %74 = vector.extract_strided_slice %50 {offsets = [0, 0], sizes = [8, 32], strides = [1, 1]} : vector<32x32xf32> to vector<8x32xf32>
    %cst_39 = arith.constant dense<0.000000e+00> : vector<16x32xf32>
    %75 = tpu.matmul %73, %74, %cst_39 {dimension_numbers = #tpu.dot_dimension_numbers<[1], [0], [0], [1], [0, 0, 1, 1], [], []>} : vector<16x8xf32>, vector<8x32xf32>, vector<16x32xf32> -> vector<16x32xf32>
    %76 = vector.extract_strided_slice %52 {offsets = [0, 0, 8], sizes = [2, 8, 8], strides = [1, 1, 1]} : vector<2x8x32xf32> to vector<2x8x8xf32>
    %77 = vector.extract_strided_slice %53 {offsets = [0, 0, 8], sizes = [2, 8, 8], strides = [1, 1, 1]} : vector<2x8x32xf32> to vector<2x8x8xf32>
    "tpu.trace_start"() <{level = 10 : i32, message = "bqd,bkd->bqk"}> : () -> ()
    %cst_40 = arith.constant dense<0.000000e+00> : vector<2x8x8xf32>
    %78 = tpu.matmul %76, %77, %cst_40 {dimension_numbers = #tpu.dot_dimension_numbers<[2], [2], [1], [1], [0, 0, 0, 1, 1, 1], [0], [0]>} : vector<2x8x8xf32>, vector<2x8x8xf32>, vector<2x8x8xf32> -> vector<2x8x8xf32>
    "tpu.trace_stop"() : () -> ()
    %cst_41 = arith.constant 0.353553385 : f32
    %79 = vector.broadcast %cst_41 : f32 to vector<2x8x8xf32>
    %80 = arith.mulf %78, %79 : vector<2x8x8xf32>
    %81 = arith.addf %80, %4 : vector<2x8x8xf32>
    %cst_42 = arith.constant dense<0xFF800000> : vector<2x8xf32>
    %82 = vector.multi_reduction <maximumf>, %81, %cst_42 [2] : vector<2x8x8xf32> to vector<2x8xf32>
    %83 = vector.shape_cast %82 : vector<2x8xf32> to vector<2x8x1xf32>
    %84 = vector.broadcast %83 : vector<2x8x1xf32> to vector<2x8x8xf32>
    %85 = arith.subf %81, %84 : vector<2x8x8xf32>
    %86 = math.exp %85 : vector<2x8x8xf32>
    %cst_43 = arith.constant dense<0.000000e+00> : vector<2x8xf32>
    %87 = vector.multi_reduction <add>, %86, %cst_43 [2] : vector<2x8x8xf32> to vector<2x8xf32>
    %88 = vector.shape_cast %87 : vector<2x8xf32> to vector<2x8x1xf32>
    %89 = tpu.reciprocal %88 {approx = true} : vector<2x8x1xf32> -> vector<2x8x1xf32>
    %90 = vector.broadcast %89 : vector<2x8x1xf32> to vector<2x8x8xf32>
    %91 = arith.mulf %86, %90 : vector<2x8x8xf32>
    %92 = vector.extract_strided_slice %54 {offsets = [0, 0, 8], sizes = [2, 8, 8], strides = [1, 1, 1]} : vector<2x8x32xf32> to vector<2x8x8xf32>
    "tpu.trace_start"() <{level = 10 : i32, message = "bqk,bkd->bqd"}> : () -> ()
    %cst_44 = arith.constant dense<0.000000e+00> : vector<2x8x8xf32>
    %93 = tpu.matmul %91, %92, %cst_44 {dimension_numbers = #tpu.dot_dimension_numbers<[2], [1], [1], [2], [0, 0, 0, 1, 1, 2], [0], [0]>} : vector<2x8x8xf32>, vector<2x8x8xf32>, vector<2x8x8xf32> -> vector<2x8x8xf32>
    "tpu.trace_stop"() : () -> ()
    %94 = vector.shape_cast %93 : vector<2x8x8xf32> to vector<16x8xf32>
    %95 = vector.extract_strided_slice %50 {offsets = [8, 0], sizes = [8, 32], strides = [1, 1]} : vector<32x32xf32> to vector<8x32xf32>
    %cst_45 = arith.constant dense<0.000000e+00> : vector<16x32xf32>
    %96 = tpu.matmul %94, %95, %cst_45 {dimension_numbers = #tpu.dot_dimension_numbers<[1], [0], [0], [1], [0, 0, 1, 1], [], []>} : vector<16x8xf32>, vector<8x32xf32>, vector<16x32xf32> -> vector<16x32xf32>
    %97 = arith.addf %75, %96 : vector<16x32xf32>
    %98 = vector.extract_strided_slice %52 {offsets = [0, 0, 16], sizes = [2, 8, 8], strides = [1, 1, 1]} : vector<2x8x32xf32> to vector<2x8x8xf32>
    %99 = vector.extract_strided_slice %53 {offsets = [0, 0, 16], sizes = [2, 8, 8], strides = [1, 1, 1]} : vector<2x8x32xf32> to vector<2x8x8xf32>
    "tpu.trace_start"() <{level = 10 : i32, message = "bqd,bkd->bqk"}> : () -> ()
    %cst_46 = arith.constant dense<0.000000e+00> : vector<2x8x8xf32>
    %100 = tpu.matmul %98, %99, %cst_46 {dimension_numbers = #tpu.dot_dimension_numbers<[2], [2], [1], [1], [0, 0, 0, 1, 1, 1], [0], [0]>} : vector<2x8x8xf32>, vector<2x8x8xf32>, vector<2x8x8xf32> -> vector<2x8x8xf32>
    "tpu.trace_stop"() : () -> ()
    %cst_47 = arith.constant 0.353553385 : f32
    %101 = vector.broadcast %cst_47 : f32 to vector<2x8x8xf32>
    %102 = arith.mulf %100, %101 : vector<2x8x8xf32>
    %103 = arith.addf %102, %4 : vector<2x8x8xf32>
    %cst_48 = arith.constant dense<0xFF800000> : vector<2x8xf32>
    %104 = vector.multi_reduction <maximumf>, %103, %cst_48 [2] : vector<2x8x8xf32> to vector<2x8xf32>
    %105 = vector.shape_cast %104 : vector<2x8xf32> to vector<2x8x1xf32>
    %106 = vector.broadcast %105 : vector<2x8x1xf32> to vector<2x8x8xf32>
    %107 = arith.subf %103, %106 : vector<2x8x8xf32>
    %108 = math.exp %107 : vector<2x8x8xf32>
    %cst_49 = arith.constant dense<0.000000e+00> : vector<2x8xf32>
    %109 = vector.multi_reduction <add>, %108, %cst_49 [2] : vector<2x8x8xf32> to vector<2x8xf32>
    %110 = vector.shape_cast %109 : vector<2x8xf32> to vector<2x8x1xf32>
    %111 = tpu.reciprocal %110 {approx = true} : vector<2x8x1xf32> -> vector<2x8x1xf32>
    %112 = vector.broadcast %111 : vector<2x8x1xf32> to vector<2x8x8xf32>
    %113 = arith.mulf %108, %112 : vector<2x8x8xf32>
    %114 = vector.extract_strided_slice %54 {offsets = [0, 0, 16], sizes = [2, 8, 8], strides = [1, 1, 1]} : vector<2x8x32xf32> to vector<2x8x8xf32>
    "tpu.trace_start"() <{level = 10 : i32, message = "bqk,bkd->bqd"}> : () -> ()
    %cst_50 = arith.constant dense<0.000000e+00> : vector<2x8x8xf32>
    %115 = tpu.matmul %113, %114, %cst_50 {dimension_numbers = #tpu.dot_dimension_numbers<[2], [1], [1], [2], [0, 0, 0, 1, 1, 2], [0], [0]>} : vector<2x8x8xf32>, vector<2x8x8xf32>, vector<2x8x8xf32> -> vector<2x8x8xf32>
    "tpu.trace_stop"() : () -> ()
    %116 = vector.shape_cast %115 : vector<2x8x8xf32> to vector<16x8xf32>
    %117 = vector.extract_strided_slice %50 {offsets = [16, 0], sizes = [8, 32], strides = [1, 1]} : vector<32x32xf32> to vector<8x32xf32>
    %cst_51 = arith.constant dense<0.000000e+00> : vector<16x32xf32>
    %118 = tpu.matmul %116, %117, %cst_51 {dimension_numbers = #tpu.dot_dimension_numbers<[1], [0], [0], [1], [0, 0, 1, 1], [], []>} : vector<16x8xf32>, vector<8x32xf32>, vector<16x32xf32> -> vector<16x32xf32>
    %119 = arith.addf %97, %118 : vector<16x32xf32>
    %120 = vector.extract_strided_slice %52 {offsets = [0, 0, 24], sizes = [2, 8, 8], strides = [1, 1, 1]} : vector<2x8x32xf32> to vector<2x8x8xf32>
    %121 = vector.extract_strided_slice %53 {offsets = [0, 0, 24], sizes = [2, 8, 8], strides = [1, 1, 1]} : vector<2x8x32xf32> to vector<2x8x8xf32>
    "tpu.trace_start"() <{level = 10 : i32, message = "bqd,bkd->bqk"}> : () -> ()
    %cst_52 = arith.constant dense<0.000000e+00> : vector<2x8x8xf32>
    %122 = tpu.matmul %120, %121, %cst_52 {dimension_numbers = #tpu.dot_dimension_numbers<[2], [2], [1], [1], [0, 0, 0, 1, 1, 1], [0], [0]>} : vector<2x8x8xf32>, vector<2x8x8xf32>, vector<2x8x8xf32> -> vector<2x8x8xf32>
    "tpu.trace_stop"() : () -> ()
    %cst_53 = arith.constant 0.353553385 : f32
    %123 = vector.broadcast %cst_53 : f32 to vector<2x8x8xf32>
    %124 = arith.mulf %122, %123 : vector<2x8x8xf32>
    %125 = arith.addf %124, %4 : vector<2x8x8xf32>
    %cst_54 = arith.constant dense<0xFF800000> : vector<2x8xf32>
    %126 = vector.multi_reduction <maximumf>, %125, %cst_54 [2] : vector<2x8x8xf32> to vector<2x8xf32>
    %127 = vector.shape_cast %126 : vector<2x8xf32> to vector<2x8x1xf32>
    %128 = vector.broadcast %127 : vector<2x8x1xf32> to vector<2x8x8xf32>
    %129 = arith.subf %125, %128 : vector<2x8x8xf32>
    %130 = math.exp %129 : vector<2x8x8xf32>
    %cst_55 = arith.constant dense<0.000000e+00> : vector<2x8xf32>
    %131 = vector.multi_reduction <add>, %130, %cst_55 [2] : vector<2x8x8xf32> to vector<2x8xf32>
    %132 = vector.shape_cast %131 : vector<2x8xf32> to vector<2x8x1xf32>
    %133 = tpu.reciprocal %132 {approx = true} : vector<2x8x1xf32> -> vector<2x8x1xf32>
    %134 = vector.broadcast %133 : vector<2x8x1xf32> to vector<2x8x8xf32>
    %135 = arith.mulf %130, %134 : vector<2x8x8xf32>
    %136 = vector.extract_strided_slice %54 {offsets = [0, 0, 24], sizes = [2, 8, 8], strides = [1, 1, 1]} : vector<2x8x32xf32> to vector<2x8x8xf32>
    "tpu.trace_start"() <{level = 10 : i32, message = "bqk,bkd->bqd"}> : () -> ()
    %cst_56 = arith.constant dense<0.000000e+00> : vector<2x8x8xf32>
    %137 = tpu.matmul %135, %136, %cst_56 {dimension_numbers = #tpu.dot_dimension_numbers<[2], [1], [1], [2], [0, 0, 0, 1, 1, 2], [0], [0]>} : vector<2x8x8xf32>, vector<2x8x8xf32>, vector<2x8x8xf32> -> vector<2x8x8xf32>
    "tpu.trace_stop"() : () -> ()
    %138 = vector.shape_cast %137 : vector<2x8x8xf32> to vector<16x8xf32>
    %139 = vector.extract_strided_slice %50 {offsets = [24, 0], sizes = [8, 32], strides = [1, 1]} : vector<32x32xf32> to vector<8x32xf32>
    %cst_57 = arith.constant dense<0.000000e+00> : vector<16x32xf32>
    %140 = tpu.matmul %138, %139, %cst_57 {dimension_numbers = #tpu.dot_dimension_numbers<[1], [0], [0], [1], [0, 0, 1, 1], [], []>} : vector<16x8xf32>, vector<8x32xf32>, vector<16x32xf32> -> vector<16x32xf32>
    %141 = arith.addf %119, %140 : vector<16x32xf32>
    %142 = vector.broadcast %51 : vector<1x32xf32> to vector<16x32xf32>
    %143 = arith.addf %141, %142 : vector<16x32xf32>
    %144 = arith.addf %1, %143 : vector<16x32xf32>
    %145 = vector.extract_strided_slice %8 {offsets = [1, 0], sizes = [1, 32], strides = [1, 1]} : vector<3x32xf32> to vector<1x32xf32>
    %146 = vector.extract_strided_slice %9 {offsets = [1, 0], sizes = [1, 32], strides = [1, 1]} : vector<3x32xf32> to vector<1x32xf32>
    %cst_58 = arith.constant dense<0.000000e+00> : vector<16xf32>
    %147 = vector.multi_reduction <add>, %144, %cst_58 [1] : vector<16x32xf32> to vector<16xf32>
    %148 = vector.shape_cast %147 : vector<16xf32> to vector<16x1xf32>
    %cst_59 = arith.constant 3.200000e+01 : f32
    %149 = vector.broadcast %cst_59 : f32 to vector<16x1xf32>
    %150 = arith.divf %148, %149 : vector<16x1xf32>
    %151 = vector.broadcast %150 : vector<16x1xf32> to vector<16x32xf32>
    %152 = arith.subf %144, %151 : vector<16x32xf32>
    %153 = arith.mulf %152, %152 : vector<16x32xf32>
    %cst_60 = arith.constant dense<0.000000e+00> : vector<16xf32>
    %154 = vector.multi_reduction <add>, %153, %cst_60 [1] : vector<16x32xf32> to vector<16xf32>
    %155 = vector.shape_cast %154 : vector<16xf32> to vector<16x1xf32>
    %cst_61 = arith.constant 0.0322580636 : f32
    %156 = vector.broadcast %cst_61 : f32 to vector<16x1xf32>
    %157 = arith.mulf %155, %156 : vector<16x1xf32>
    %158 = math.sqrt %157 : vector<16x1xf32>
    %159 = vector.broadcast %150 : vector<16x1xf32> to vector<16x32xf32>
    %160 = arith.subf %144, %159 : vector<16x32xf32>
    %161 = vector.broadcast %145 : vector<1x32xf32> to vector<16x32xf32>
    %162 = arith.mulf %161, %160 : vector<16x32xf32>
    %cst_62 = arith.constant 9.99999997E-7 : f32
    %163 = vector.broadcast %cst_62 : f32 to vector<16x1xf32>
    %164 = arith.addf %158, %163 : vector<16x1xf32>
    %165 = vector.broadcast %164 : vector<16x1xf32> to vector<16x32xf32>
    %166 = arith.divf %162, %165 : vector<16x32xf32>
    %167 = vector.broadcast %146 : vector<1x32xf32> to vector<16x32xf32>
    %168 = arith.addf %166, %167 : vector<16x32xf32>
    %169 = vector.extract_strided_slice %6 {offsets = [1, 0, 0], sizes = [1, 32, 128], strides = [1, 1, 1]} : vector<2x32x128xf32> to vector<1x32x128xf32>
    %170 = vector.shape_cast %169 : vector<1x32x128xf32> to vector<32x128xf32>
    %171 = vector.extract_strided_slice %7 {offsets = [1, 0, 0], sizes = [1, 1, 128], strides = [1, 1, 1]} : vector<2x1x128xf32> to vector<1x1x128xf32>
    %172 = vector.shape_cast %171 : vector<1x1x128xf32> to vector<1x128xf32>
    %173 = vector.extract_strided_slice %170 {offsets = [0, 0], sizes = [32, 32], strides = [1, 1]} : vector<32x128xf32> to vector<32x32xf32>
    %cst_63 = arith.constant dense<0.000000e+00> : vector<16x32xf32>
    %174 = tpu.matmul %168, %173, %cst_63 {dimension_numbers = #tpu.dot_dimension_numbers<[1], [0], [0], [1], [0, 0, 1, 1], [], []>} : vector<16x32xf32>, vector<32x32xf32>, vector<16x32xf32> -> vector<16x32xf32>
    %175 = vector.extract_strided_slice %172 {offsets = [0, 0], sizes = [1, 32], strides = [1, 1]} : vector<1x128xf32> to vector<1x32xf32>
    %176 = vector.broadcast %175 : vector<1x32xf32> to vector<16x32xf32>
    %177 = arith.addf %174, %176 : vector<16x32xf32>
    %178 = vector.extract_strided_slice %170 {offsets = [0, 32], sizes = [32, 64], strides = [1, 1]} : vector<32x128xf32> to vector<32x64xf32>
    %cst_64 = arith.constant dense<0.000000e+00> : vector<32x64xf32>
    %179 = tpu.matmul %3, %178, %cst_64 {dimension_numbers = #tpu.dot_dimension_numbers<[1], [0], [0], [1], [0, 0, 1, 1], [], []>} : vector<32x32xf32>, vector<32x64xf32>, vector<32x64xf32> -> vector<32x64xf32>
    %180 = vector.extract_strided_slice %172 {offsets = [0, 32], sizes = [1, 64], strides = [1, 1]} : vector<1x128xf32> to vector<1x64xf32>
    %181 = vector.broadcast %180 : vector<1x64xf32> to vector<32x64xf32>
    %182 = arith.addf %179, %181 : vector<32x64xf32>
    %183 = vector.extract_strided_slice %182 {offsets = [0, 0], sizes = [32, 32], strides = [1, 1]} : vector<32x64xf32> to vector<32x32xf32>
    %184 = vector.extract_strided_slice %182 {offsets = [0, 32], sizes = [32, 32], strides = [1, 1]} : vector<32x64xf32> to vector<32x32xf32>
    %185 = vector.extract_strided_slice %170 {offsets = [0, 96], sizes = [32, 32], strides = [1, 1]} : vector<32x128xf32> to vector<32x32xf32>
    %186 = vector.extract_strided_slice %172 {offsets = [0, 96], sizes = [1, 32], strides = [1, 1]} : vector<1x128xf32> to vector<1x32xf32>
    %187 = vector.shape_cast %177 : vector<16x32xf32> to vector<2x8x32xf32>
    %188 = vector.shape_cast %183 : vector<32x32xf32> to vector<2x16x32xf32>
    %189 = vector.shape_cast %184 : vector<32x32xf32> to vector<2x16x32xf32>
    %190 = vector.extract_strided_slice %187 {offsets = [0, 0, 0], sizes = [2, 8, 8], strides = [1, 1, 1]} : vector<2x8x32xf32> to vector<2x8x8xf32>
    %191 = vector.extract_strided_slice %188 {offsets = [0, 0, 0], sizes = [2, 16, 8], strides = [1, 1, 1]} : vector<2x16x32xf32> to vector<2x16x8xf32>
    "tpu.trace_start"() <{level = 10 : i32, message = "bqd,bkd->bqk"}> : () -> ()
    %cst_65 = arith.constant dense<0.000000e+00> : vector<2x8x16xf32>
    %192 = tpu.matmul %190, %191, %cst_65 {dimension_numbers = #tpu.dot_dimension_numbers<[2], [2], [1], [1], [0, 0, 0, 1, 1, 1], [0], [0]>} : vector<2x8x8xf32>, vector<2x16x8xf32>, vector<2x8x16xf32> -> vector<2x8x16xf32>
    "tpu.trace_stop"() : () -> ()
    %cst_66 = arith.constant 0.353553385 : f32
    %193 = vector.broadcast %cst_66 : f32 to vector<2x8x16xf32>
    %194 = arith.mulf %192, %193 : vector<2x8x16xf32>
    %195 = vector.broadcast %5 : vector<2x1x16xf32> to vector<2x8x16xf32>
    %196 = arith.addf %194, %195 : vector<2x8x16xf32>
    %cst_67 = arith.constant dense<0xFF800000> : vector<2x8xf32>
    %197 = vector.multi_reduction <maximumf>, %196, %cst_67 [2] : vector<2x8x16xf32> to vector<2x8xf32>
    %198 = vector.shape_cast %197 : vector<2x8xf32> to vector<2x8x1xf32>
    %199 = vector.broadcast %198 : vector<2x8x1xf32> to vector<2x8x16xf32>
    %200 = arith.subf %196, %199 : vector<2x8x16xf32>
    %201 = math.exp %200 : vector<2x8x16xf32>
    %cst_68 = arith.constant dense<0.000000e+00> : vector<2x8xf32>
    %202 = vector.multi_reduction <add>, %201, %cst_68 [2] : vector<2x8x16xf32> to vector<2x8xf32>
    %203 = vector.shape_cast %202 : vector<2x8xf32> to vector<2x8x1xf32>
    %204 = tpu.reciprocal %203 {approx = true} : vector<2x8x1xf32> -> vector<2x8x1xf32>
    %205 = vector.broadcast %204 : vector<2x8x1xf32> to vector<2x8x16xf32>
    %206 = arith.mulf %201, %205 : vector<2x8x16xf32>
    %207 = vector.extract_strided_slice %189 {offsets = [0, 0, 0], sizes = [2, 16, 8], strides = [1, 1, 1]} : vector<2x16x32xf32> to vector<2x16x8xf32>
    "tpu.trace_start"() <{level = 10 : i32, message = "bqk,bkd->bqd"}> : () -> ()
    %cst_69 = arith.constant dense<0.000000e+00> : vector<2x8x8xf32>
    %208 = tpu.matmul %206, %207, %cst_69 {dimension_numbers = #tpu.dot_dimension_numbers<[2], [1], [1], [2], [0, 0, 0, 1, 1, 2], [0], [0]>} : vector<2x8x16xf32>, vector<2x16x8xf32>, vector<2x8x8xf32> -> vector<2x8x8xf32>
    "tpu.trace_stop"() : () -> ()
    %209 = vector.shape_cast %208 : vector<2x8x8xf32> to vector<16x8xf32>
    %210 = vector.extract_strided_slice %185 {offsets = [0, 0], sizes = [8, 32], strides = [1, 1]} : vector<32x32xf32> to vector<8x32xf32>
    %cst_70 = arith.constant dense<0.000000e+00> : vector<16x32xf32>
    %211 = tpu.matmul %209, %210, %cst_70 {dimension_numbers = #tpu.dot_dimension_numbers<[1], [0], [0], [1], [0, 0, 1, 1], [], []>} : vector<16x8xf32>, vector<8x32xf32>, vector<16x32xf32> -> vector<16x32xf32>
    %212 = vector.extract_strided_slice %187 {offsets = [0, 0, 8], sizes = [2, 8, 8], strides = [1, 1, 1]} : vector<2x8x32xf32> to vector<2x8x8xf32>
    %213 = vector.extract_strided_slice %188 {offsets = [0, 0, 8], sizes = [2, 16, 8], strides = [1, 1, 1]} : vector<2x16x32xf32> to vector<2x16x8xf32>
    "tpu.trace_start"() <{level = 10 : i32, message = "bqd,bkd->bqk"}> : () -> ()
    %cst_71 = arith.constant dense<0.000000e+00> : vector<2x8x16xf32>
    %214 = tpu.matmul %212, %213, %cst_71 {dimension_numbers = #tpu.dot_dimension_numbers<[2], [2], [1], [1], [0, 0, 0, 1, 1, 1], [0], [0]>} : vector<2x8x8xf32>, vector<2x16x8xf32>, vector<2x8x16xf32> -> vector<2x8x16xf32>
    "tpu.trace_stop"() : () -> ()
    %cst_72 = arith.constant 0.353553385 : f32
    %215 = vector.broadcast %cst_72 : f32 to vector<2x8x16xf32>
    %216 = arith.mulf %214, %215 : vector<2x8x16xf32>
    %217 = vector.broadcast %5 : vector<2x1x16xf32> to vector<2x8x16xf32>
    %218 = arith.addf %216, %217 : vector<2x8x16xf32>
    %cst_73 = arith.constant dense<0xFF800000> : vector<2x8xf32>
    %219 = vector.multi_reduction <maximumf>, %218, %cst_73 [2] : vector<2x8x16xf32> to vector<2x8xf32>
    %220 = vector.shape_cast %219 : vector<2x8xf32> to vector<2x8x1xf32>
    %221 = vector.broadcast %220 : vector<2x8x1xf32> to vector<2x8x16xf32>
    %222 = arith.subf %218, %221 : vector<2x8x16xf32>
    %223 = math.exp %222 : vector<2x8x16xf32>
    %cst_74 = arith.constant dense<0.000000e+00> : vector<2x8xf32>
    %224 = vector.multi_reduction <add>, %223, %cst_74 [2] : vector<2x8x16xf32> to vector<2x8xf32>
    %225 = vector.shape_cast %224 : vector<2x8xf32> to vector<2x8x1xf32>
    %226 = tpu.reciprocal %225 {approx = true} : vector<2x8x1xf32> -> vector<2x8x1xf32>
    %227 = vector.broadcast %226 : vector<2x8x1xf32> to vector<2x8x16xf32>
    %228 = arith.mulf %223, %227 : vector<2x8x16xf32>
    %229 = vector.extract_strided_slice %189 {offsets = [0, 0, 8], sizes = [2, 16, 8], strides = [1, 1, 1]} : vector<2x16x32xf32> to vector<2x16x8xf32>
    "tpu.trace_start"() <{level = 10 : i32, message = "bqk,bkd->bqd"}> : () -> ()
    %cst_75 = arith.constant dense<0.000000e+00> : vector<2x8x8xf32>
    %230 = tpu.matmul %228, %229, %cst_75 {dimension_numbers = #tpu.dot_dimension_numbers<[2], [1], [1], [2], [0, 0, 0, 1, 1, 2], [0], [0]>} : vector<2x8x16xf32>, vector<2x16x8xf32>, vector<2x8x8xf32> -> vector<2x8x8xf32>
    "tpu.trace_stop"() : () -> ()
    %231 = vector.shape_cast %230 : vector<2x8x8xf32> to vector<16x8xf32>
    %232 = vector.extract_strided_slice %185 {offsets = [8, 0], sizes = [8, 32], strides = [1, 1]} : vector<32x32xf32> to vector<8x32xf32>
    %cst_76 = arith.constant dense<0.000000e+00> : vector<16x32xf32>
    %233 = tpu.matmul %231, %232, %cst_76 {dimension_numbers = #tpu.dot_dimension_numbers<[1], [0], [0], [1], [0, 0, 1, 1], [], []>} : vector<16x8xf32>, vector<8x32xf32>, vector<16x32xf32> -> vector<16x32xf32>
    %234 = arith.addf %211, %233 : vector<16x32xf32>
    %235 = vector.extract_strided_slice %187 {offsets = [0, 0, 16], sizes = [2, 8, 8], strides = [1, 1, 1]} : vector<2x8x32xf32> to vector<2x8x8xf32>
    %236 = vector.extract_strided_slice %188 {offsets = [0, 0, 16], sizes = [2, 16, 8], strides = [1, 1, 1]} : vector<2x16x32xf32> to vector<2x16x8xf32>
    "tpu.trace_start"() <{level = 10 : i32, message = "bqd,bkd->bqk"}> : () -> ()
    %cst_77 = arith.constant dense<0.000000e+00> : vector<2x8x16xf32>
    %237 = tpu.matmul %235, %236, %cst_77 {dimension_numbers = #tpu.dot_dimension_numbers<[2], [2], [1], [1], [0, 0, 0, 1, 1, 1], [0], [0]>} : vector<2x8x8xf32>, vector<2x16x8xf32>, vector<2x8x16xf32> -> vector<2x8x16xf32>
    "tpu.trace_stop"() : () -> ()
    %cst_78 = arith.constant 0.353553385 : f32
    %238 = vector.broadcast %cst_78 : f32 to vector<2x8x16xf32>
    %239 = arith.mulf %237, %238 : vector<2x8x16xf32>
    %240 = vector.broadcast %5 : vector<2x1x16xf32> to vector<2x8x16xf32>
    %241 = arith.addf %239, %240 : vector<2x8x16xf32>
    %cst_79 = arith.constant dense<0xFF800000> : vector<2x8xf32>
    %242 = vector.multi_reduction <maximumf>, %241, %cst_79 [2] : vector<2x8x16xf32> to vector<2x8xf32>
    %243 = vector.shape_cast %242 : vector<2x8xf32> to vector<2x8x1xf32>
    %244 = vector.broadcast %243 : vector<2x8x1xf32> to vector<2x8x16xf32>
    %245 = arith.subf %241, %244 : vector<2x8x16xf32>
    %246 = math.exp %245 : vector<2x8x16xf32>
    %cst_80 = arith.constant dense<0.000000e+00> : vector<2x8xf32>
    %247 = vector.multi_reduction <add>, %246, %cst_80 [2] : vector<2x8x16xf32> to vector<2x8xf32>
    %248 = vector.shape_cast %247 : vector<2x8xf32> to vector<2x8x1xf32>
    %249 = tpu.reciprocal %248 {approx = true} : vector<2x8x1xf32> -> vector<2x8x1xf32>
    %250 = vector.broadcast %249 : vector<2x8x1xf32> to vector<2x8x16xf32>
    %251 = arith.mulf %246, %250 : vector<2x8x16xf32>
    %252 = vector.extract_strided_slice %189 {offsets = [0, 0, 16], sizes = [2, 16, 8], strides = [1, 1, 1]} : vector<2x16x32xf32> to vector<2x16x8xf32>
    "tpu.trace_start"() <{level = 10 : i32, message = "bqk,bkd->bqd"}> : () -> ()
    %cst_81 = arith.constant dense<0.000000e+00> : vector<2x8x8xf32>
    %253 = tpu.matmul %251, %252, %cst_81 {dimension_numbers = #tpu.dot_dimension_numbers<[2], [1], [1], [2], [0, 0, 0, 1, 1, 2], [0], [0]>} : vector<2x8x16xf32>, vector<2x16x8xf32>, vector<2x8x8xf32> -> vector<2x8x8xf32>
    "tpu.trace_stop"() : () -> ()
    %254 = vector.shape_cast %253 : vector<2x8x8xf32> to vector<16x8xf32>
    %255 = vector.extract_strided_slice %185 {offsets = [16, 0], sizes = [8, 32], strides = [1, 1]} : vector<32x32xf32> to vector<8x32xf32>
    %cst_82 = arith.constant dense<0.000000e+00> : vector<16x32xf32>
    %256 = tpu.matmul %254, %255, %cst_82 {dimension_numbers = #tpu.dot_dimension_numbers<[1], [0], [0], [1], [0, 0, 1, 1], [], []>} : vector<16x8xf32>, vector<8x32xf32>, vector<16x32xf32> -> vector<16x32xf32>
    %257 = arith.addf %234, %256 : vector<16x32xf32>
    %258 = vector.extract_strided_slice %187 {offsets = [0, 0, 24], sizes = [2, 8, 8], strides = [1, 1, 1]} : vector<2x8x32xf32> to vector<2x8x8xf32>
    %259 = vector.extract_strided_slice %188 {offsets = [0, 0, 24], sizes = [2, 16, 8], strides = [1, 1, 1]} : vector<2x16x32xf32> to vector<2x16x8xf32>
    "tpu.trace_start"() <{level = 10 : i32, message = "bqd,bkd->bqk"}> : () -> ()
    %cst_83 = arith.constant dense<0.000000e+00> : vector<2x8x16xf32>
    %260 = tpu.matmul %258, %259, %cst_83 {dimension_numbers = #tpu.dot_dimension_numbers<[2], [2], [1], [1], [0, 0, 0, 1, 1, 1], [0], [0]>} : vector<2x8x8xf32>, vector<2x16x8xf32>, vector<2x8x16xf32> -> vector<2x8x16xf32>
    "tpu.trace_stop"() : () -> ()
    %cst_84 = arith.constant 0.353553385 : f32
    %261 = vector.broadcast %cst_84 : f32 to vector<2x8x16xf32>
    %262 = arith.mulf %260, %261 : vector<2x8x16xf32>
    %263 = vector.broadcast %5 : vector<2x1x16xf32> to vector<2x8x16xf32>
    %264 = arith.addf %262, %263 : vector<2x8x16xf32>
    %cst_85 = arith.constant dense<0xFF800000> : vector<2x8xf32>
    %265 = vector.multi_reduction <maximumf>, %264, %cst_85 [2] : vector<2x8x16xf32> to vector<2x8xf32>
    %266 = vector.shape_cast %265 : vector<2x8xf32> to vector<2x8x1xf32>
    %267 = vector.broadcast %266 : vector<2x8x1xf32> to vector<2x8x16xf32>
    %268 = arith.subf %264, %267 : vector<2x8x16xf32>
    %269 = math.exp %268 : vector<2x8x16xf32>
    %cst_86 = arith.constant dense<0.000000e+00> : vector<2x8xf32>
    %270 = vector.multi_reduction <add>, %269, %cst_86 [2] : vector<2x8x16xf32> to vector<2x8xf32>
    %271 = vector.shape_cast %270 : vector<2x8xf32> to vector<2x8x1xf32>
    %272 = tpu.reciprocal %271 {approx = true} : vector<2x8x1xf32> -> vector<2x8x1xf32>
    %273 = vector.broadcast %272 : vector<2x8x1xf32> to vector<2x8x16xf32>
    %274 = arith.mulf %269, %273 : vector<2x8x16xf32>
    %275 = vector.extract_strided_slice %189 {offsets = [0, 0, 24], sizes = [2, 16, 8], strides = [1, 1, 1]} : vector<2x16x32xf32> to vector<2x16x8xf32>
    "tpu.trace_start"() <{level = 10 : i32, message = "bqk,bkd->bqd"}> : () -> ()
    %cst_87 = arith.constant dense<0.000000e+00> : vector<2x8x8xf32>
    %276 = tpu.matmul %274, %275, %cst_87 {dimension_numbers = #tpu.dot_dimension_numbers<[2], [1], [1], [2], [0, 0, 0, 1, 1, 2], [0], [0]>} : vector<2x8x16xf32>, vector<2x16x8xf32>, vector<2x8x8xf32> -> vector<2x8x8xf32>
    "tpu.trace_stop"() : () -> ()
    %277 = vector.shape_cast %276 : vector<2x8x8xf32> to vector<16x8xf32>
    %278 = vector.extract_strided_slice %185 {offsets = [24, 0], sizes = [8, 32], strides = [1, 1]} : vector<32x32xf32> to vector<8x32xf32>
    %cst_88 = arith.constant dense<0.000000e+00> : vector<16x32xf32>
    %279 = tpu.matmul %277, %278, %cst_88 {dimension_numbers = #tpu.dot_dimension_numbers<[1], [0], [0], [1], [0, 0, 1, 1], [], []>} : vector<16x8xf32>, vector<8x32xf32>, vector<16x32xf32> -> vector<16x32xf32>
    %280 = arith.addf %257, %279 : vector<16x32xf32>
    %281 = vector.broadcast %186 : vector<1x32xf32> to vector<16x32xf32>
    %282 = arith.addf %280, %281 : vector<16x32xf32>
    %283 = arith.addf %144, %282 : vector<16x32xf32>
    %284 = vector.extract_strided_slice %8 {offsets = [2, 0], sizes = [1, 32], strides = [1, 1]} : vector<3x32xf32> to vector<1x32xf32>
    %285 = vector.extract_strided_slice %9 {offsets = [2, 0], sizes = [1, 32], strides = [1, 1]} : vector<3x32xf32> to vector<1x32xf32>
    %cst_89 = arith.constant dense<0.000000e+00> : vector<16xf32>
    %286 = vector.multi_reduction <add>, %283, %cst_89 [1] : vector<16x32xf32> to vector<16xf32>
    %287 = vector.shape_cast %286 : vector<16xf32> to vector<16x1xf32>
    %cst_90 = arith.constant 3.200000e+01 : f32
    %288 = vector.broadcast %cst_90 : f32 to vector<16x1xf32>
    %289 = arith.divf %287, %288 : vector<16x1xf32>
    %290 = vector.broadcast %289 : vector<16x1xf32> to vector<16x32xf32>
    %291 = arith.subf %283, %290 : vector<16x32xf32>
    %292 = arith.mulf %291, %291 : vector<16x32xf32>
    %cst_91 = arith.constant dense<0.000000e+00> : vector<16xf32>
    %293 = vector.multi_reduction <add>, %292, %cst_91 [1] : vector<16x32xf32> to vector<16xf32>
    %294 = vector.shape_cast %293 : vector<16xf32> to vector<16x1xf32>
    %cst_92 = arith.constant 0.0322580636 : f32
    %295 = vector.broadcast %cst_92 : f32 to vector<16x1xf32>
    %296 = arith.mulf %294, %295 : vector<16x1xf32>
    %297 = math.sqrt %296 : vector<16x1xf32>
    %298 = vector.broadcast %289 : vector<16x1xf32> to vector<16x32xf32>
    %299 = arith.subf %283, %298 : vector<16x32xf32>
    %300 = vector.broadcast %284 : vector<1x32xf32> to vector<16x32xf32>
    %301 = arith.mulf %300, %299 : vector<16x32xf32>
    %cst_93 = arith.constant 9.99999997E-7 : f32
    %302 = vector.broadcast %cst_93 : f32 to vector<16x1xf32>
    %303 = arith.addf %297, %302 : vector<16x1xf32>
    %304 = vector.broadcast %303 : vector<16x1xf32> to vector<16x32xf32>
    %305 = arith.divf %301, %304 : vector<16x32xf32>
    %306 = vector.broadcast %285 : vector<1x32xf32> to vector<16x32xf32>
    %307 = arith.addf %305, %306 : vector<16x32xf32>
    %cst_94 = arith.constant dense<0.000000e+00> : vector<16x64xf32>
    %308 = tpu.matmul %307, %10, %cst_94 {dimension_numbers = #tpu.dot_dimension_numbers<[1], [0], [0], [1], [0, 0, 1, 1], [], []>} : vector<16x32xf32>, vector<32x64xf32>, vector<16x64xf32> -> vector<16x64xf32>
    %309 = vector.broadcast %11 : vector<1x64xf32> to vector<16x64xf32>
    %310 = arith.addf %308, %309 : vector<16x64xf32>
    %cst_95 = arith.constant 0.000000e+00 : f32
    %311 = vector.broadcast %cst_95 : f32 to vector<16x64xf32>
    %312 = arith.maximumf %310, %311 : vector<16x64xf32>
    %cst_96 = arith.constant dense<0.000000e+00> : vector<16x32xf32>
    %313 = tpu.matmul %312, %12, %cst_96 {dimension_numbers = #tpu.dot_dimension_numbers<[1], [0], [0], [1], [0, 0, 1, 1], [], []>} : vector<16x64xf32>, vector<64x32xf32>, vector<16x32xf32> -> vector<16x32xf32>
    %314 = vector.broadcast %13 : vector<1x32xf32> to vector<16x32xf32>
    %315 = arith.addf %313, %314 : vector<16x32xf32>
    %316 = arith.addf %283, %315 : vector<16x32xf32>
    %317 = vector.shape_cast %316 : vector<16x32xf32> to vector<2x8x32xf32>
    %c0_97 = arith.constant 0 : index
    %c0_98 = arith.constant 0 : index
    %c0_99 = arith.constant 0 : index
    %318 = vector.load %arg13[%c0_97, %c0_98, %c0_99] : memref<2x8x32xf32, #tpu.memory_space<vmem>>, vector<2x8x32xf32>
    tpu.vector_store %arg13[%c0_97, %c0_98, %c0_99], %317 {strides = array<i32>} : memref<2x8x32xf32, #tpu.memory_space<vmem>>, vector<2x8x32xf32>,
    return
  }
  func.func @transform_0(%arg0: i32) -> (i32, i32, i32) {
    %c0_i32 = arith.constant 0 : i32
    %c0_i32_0 = arith.constant 0 : i32
    %c0_i32_1 = arith.constant 0 : i32
    %c0_i32_2 = arith.constant 0 : i32
    return %c0_i32, %c0_i32_0, %c0_i32_1 : i32, i32, i32
  }
  func.func @transform_1(%arg0: i32) -> (i32, i32, i32) {
    %c0_i32 = arith.constant 0 : i32
    %c0_i32_0 = arith.constant 0 : i32
    %c0_i32_1 = arith.constant 0 : i32
    %c0_i32_2 = arith.constant 0 : i32
    return %c0_i32, %c0_i32_0, %c0_i32_1 : i32, i32, i32
  }
  func.func @transform_2(%arg0: i32) -> (i32, i32, i32) {
    %c0_i32 = arith.constant 0 : i32
    %c0_i32_0 = arith.constant 0 : i32
    %c0_i32_1 = arith.constant 0 : i32
    %c0_i32_2 = arith.constant 0 : i32
    return %c0_i32, %c0_i32_0, %c0_i32_1 : i32, i32, i32
  }
  func.func @transform_3(%arg0: i32) -> (i32, i32, i32) {
    %c0_i32 = arith.constant 0 : i32
    %c0_i32_0 = arith.constant 0 : i32
    %c0_i32_1 = arith.constant 0 : i32
    %c0_i32_2 = arith.constant 0 : i32
    return %c0_i32, %c0_i32_0, %c0_i32_1 : i32, i32, i32
  }
  func.func @transform_4(%arg0: i32) -> (i32, i32, i32) {
    %c0_i32 = arith.constant 0 : i32
    %c0_i32_0 = arith.constant 0 : i32
    %c0_i32_1 = arith.constant 0 : i32
    %c0_i32_2 = arith.constant 0 : i32
    return %c0_i32, %c0_i32_0, %c0_i32_1 : i32, i32, i32
  }
  func.func @transform_5(%arg0: i32) -> (i32, i32, i32) {
    %c0_i32 = arith.constant 0 : i32
    %c0_i32_0 = arith.constant 0 : i32
    %c0_i32_1 = arith.constant 0 : i32
    %c0_i32_2 = arith.constant 0 : i32
    return %c0_i32, %c0_i32_0, %c0_i32_1 : i32, i32, i32
  }
  func.func @transform_6(%arg0: i32) -> (i32, i32) {
    %c0_i32 = arith.constant 0 : i32
    %c0_i32_0 = arith.constant 0 : i32
    %c0_i32_1 = arith.constant 0 : i32
    return %c0_i32, %c0_i32_0 : i32, i32
  }
  func.func @transform_7(%arg0: i32) -> (i32, i32) {
    %c0_i32 = arith.constant 0 : i32
    %c0_i32_0 = arith.constant 0 : i32
    %c0_i32_1 = arith.constant 0 : i32
    return %c0_i32, %c0_i32_0 : i32, i32
  }
  func.func @transform_8(%arg0: i32) -> (i32, i32) {
    %c0_i32 = arith.constant 0 : i32
    %c0_i32_0 = arith.constant 0 : i32
    %c0_i32_1 = arith.constant 0 : i32
    return %c0_i32, %c0_i32_0 : i32, i32
  }
  func.func @transform_9(%arg0: i32) -> (i32, i32) {
    %c0_i32 = arith.constant 0 : i32
    %c0_i32_0 = arith.constant 0 : i32
    %c0_i32_1 = arith.constant 0 : i32
    return %c0_i32, %c0_i32_0 : i32, i32
  }
  func.func @transform_10(%arg0: i32) -> (i32, i32) {
    %c0_i32 = arith.constant 0 : i32
    %c0_i32_0 = arith.constant 0 : i32
    %c0_i32_1 = arith.constant 0 : i32
    return %c0_i32, %c0_i32_0 : i32, i32
  }
  func.func @transform_11(%arg0: i32) -> (i32, i32) {
    %c0_i32 = arith.constant 0 : i32
    %c0_i32_0 = arith.constant 0 : i32
    %c0_i32_1 = arith.constant 0 : i32
    return %c0_i32, %c0_i32_0 : i32, i32
  }
  func.func @transform_12(%arg0: i32) -> (i32, i32, i32) {
    %c0_i32 = arith.constant 0 : i32
    %c0_i32_0 = arith.constant 0 : i32
    %c0_i32_1 = arith.constant 0 : i32
    %c0_i32_2 = arith.constant 0 : i32
    return %c0_i32, %c0_i32_0, %c0_i32_1 : i32, i32, i32
  }
}

</mosaic_0001>

<bundles_post_ra>
// kernel: tpu_custom_call.1
= control target key start
LH: loop header
LB: loop body
LE: loop exit
PB: predicated region body
PF: predicated region fallthrough
CT: control target
= control target key end

     0   :  { %17 = vsyncpa [#allocation3], 0  ;;  %s5988_s0 = inlined_call_operand.hbm [shape: f32[2,8,32], index: 0, kind: input, shape index: {}]   ;;  %s5989_s1 = inlined_call_operand.vmem [shape: f32[2,16,32], index: 1, kind: input, shape index: {}]   ;;  %s5990_s2 = inlined_call_operand.hbm [shape: f32[2,8,8], index: 2, kind: input, shape index: {}]   ;;  %s5991_s3 = inlined_call_operand.hbm [shape: f32[2,1,16], index: 3, kind: input, shape index: {}]   ;;  %s5992_s4 = inlined_call_operand.vmem [shape: f32[2,32,128], index: 4, kind: input, shape index: {}]   ;;  %s5993_s5 = inlined_call_operand.hbm [shape: f32[2,1,128], index: 5, kind: input, shape index: {}]   ;;  %s5994_s6 = inlined_call_operand.vmem [shape: f32[3,32], index: 6, kind: input, shape index: {}]   ;;  %s5995_s7 = inlined_call_operand.hbm [shape: f32[3,32], index: 7, kind: input, shape index: {}]   ;;  %s5996_s8 = inlined_call_operand.hbm [shape: f32[32,64], index: 8, kind: input, shape index: {}]   ;;  %s5997_s9 = inlined_call_operand.vmem [shape: f32[1,64], index: 9, kind: input, shape index: {}]   ;;  %s5998_s10 = inlined_call_operand.vmem [shape: f32[64,32], index: 10, kind: input, shape index: {}]   ;;  %s5999_s11 = inlined_call_operand.vmem [shape: f32[1,32], index: 11, kind: input, shape index: {}]   ;;  %s6000_s12 = inlined_call_operand.hbm [shape: f32[2,8,32], index: 12, kind: output, shape index: {}]  }
   0x1   :  { %18 = vsyncpa [#allocation6], 0 }
   0x2   :  { %19 = vsyncpa [#allocation9], 0 }
   0x3   :  { %20 = vsyncpa [#allocation12], 0 }
   0x4   :  { %21 = vsyncpa [#allocation4], 0  ;;  %s5243_s21 = smov [#allocation5]   ;;  %s5079_s25 = scalar_lea.hbm %s5990_s2, 256 }
   0x5   :  { %s41_s22 = sshll.u32 %s5243_s21, 4  ;;  %p5080_p0 = scmp.ne.s32.totalorder %s5990_s2, %s5079_s25  ;;  %s42_s22 = int_to_ptr.vmem [resolvable:$true] %s41_s22 }
   0x6   :  { %p5083_p1 = scmp.lt.u32.totalorder %s5079_s25, %s5990_s2 }
   0x8   :  { %p5085_p2 = pnand %p5083_p1, %p5080_p0 }
   0xa   :  { %5088 = shalt.err (!%p5085_p2)
}
   0xb   :  { %s5089_s30 = scalar_lea.vmem %s42_s22, 256  ;;  %p5094_p4 = scmp.lt.s32.totalorder %s42_s22, %s42_s22 }
   0xc   :  { %p5090_p3 = scmp.ne.s32.totalorder %s42_s22, %s5089_s30  ;;  %p5095_p5 = scmp.lt.s32.totalorder %s5089_s30, %s5089_s30 }
   0xe   :  { %p5096_p6 = por %p5095_p5, %p5094_p4 }
  0x10   :  { %p5097_p7 = pnand %p5096_p6, %p5090_p3 }
  0x12   :  { %5100 = shalt.err (!%p5097_p7)
}
  0x13   :  { %s5244_s13 = smov 128   ;;  %s5245_s14 = smov 8  }
  0x14   :  { %47 = dma.hbm_to_vmem [thread:$0]  %s5990_s2, 256, %s42_s22, [#allocation6], %s5244_s13, %s5244_s13, %s5245_s14  }
  0x15   :  { %s5246_s17 = smov [#allocation8]   ;;  %s5247_s19 = smov [#allocation2]  }
  0x16   :  { %s67_s18 = sshll.u32 %s5246_s17, 4  ;;  %s27_s20 = sshll.u32 %s5247_s19, 4  ;;  %s68_s18 = int_to_ptr.vmem [resolvable:$true] %s67_s18  ;;  %s28_s20 = int_to_ptr.vmem [resolvable:$true] %s27_s20 }
  0x17   :  { %s5101_s24 = scalar_lea.hbm %s5993_s5, 32 }
  0x18   :  { %p5102_p8 = scmp.ne.s32.totalorder %s5993_s5, %s5101_s24  ;;  %p5105_p9 = scmp.lt.u32.totalorder %s5101_s24, %s5993_s5 }
  0x1a   :  { %p5107_p10 = pnand %p5105_p9, %p5102_p8 }
  0x1c   :  { %5110 = shalt.err (!%p5107_p10)
}
  0x1d   :  { %s5111_s2 = scalar_lea.vmem %s68_s18, 32  ;;  %p5116_p12 = scmp.lt.s32.totalorder %s68_s18, %s68_s18 }
  0x1e   :  { %p5112_p11 = scmp.ne.s32.totalorder %s68_s18, %s5111_s2  ;;  %p5117_p13 = scmp.lt.s32.totalorder %s5111_s2, %s5111_s2 }
  0x20   :  { %p5118_p0 = por %p5117_p13, %p5116_p12 }
  0x22   :  { %p5119_p1 = pnand %p5118_p0, %p5112_p11 }
  0x24   :  { %5122 = shalt.err (!%p5119_p1)
}
  0x25   :  { %s5248_s22 = smov 16   ;;  %s5249_s29 = smov 1  }
  0x26   :  { %73 = dma.hbm_to_vmem [thread:$0]  %s5993_s5, 32, %s68_s18, [#allocation9], %s5248_s22, %s5248_s22, %s5249_s29  }
  0x27   :  { %s5123_s19 = scalar_lea.hbm %s5988_s0, 256 }
  0x28   :  { %p5124_p2 = scmp.ne.s32.totalorder %s5988_s0, %s5123_s19  ;;  %p5127_p3 = scmp.lt.u32.totalorder %s5123_s19, %s5988_s0 }
  0x2a   :  { %p5129_p4 = pnand %p5127_p3, %p5124_p2 }
  0x2c   :  { %5132 = shalt.err (!%p5129_p4)
}
  0x2d   :  { %s5133_s26 = scalar_lea.vmem %s28_s20, 256  ;;  %p5138_p6 = scmp.lt.s32.totalorder %s28_s20, %s28_s20 }
  0x2e   :  { %p5134_p5 = scmp.ne.s32.totalorder %s28_s20, %s5133_s26  ;;  %p5139_p7 = scmp.lt.s32.totalorder %s5133_s26, %s5133_s26 }
  0x30   :  { %p5140_p8 = por %p5139_p7, %p5138_p6 }
  0x32   :  { %p5141_p9 = pnand %p5140_p8, %p5134_p5 }
  0x34   :  { %5144 = shalt.err (!%p5141_p9)
}
  0x35   :  { %33 = dma.hbm_to_vmem [thread:$0]  %s5988_s0, 256, %s28_s20, [#allocation3], %s5244_s13, %s5244_s13, %s5245_s14  }
  0x36   :  { %s5250_s27 = smov [#allocation7]   ;;  %s5251_s2 = smov [#allocation10]  }
  0x37   :  { %s53_s28 = sshll.u32 %s5250_s27, 4  ;;  %s82_s30 = sshll.u32 %s5251_s2, 4  ;;  %s54_s28 = int_to_ptr.vmem [resolvable:$true] %s53_s28  ;;  %s83_s30 = int_to_ptr.vmem [resolvable:$true] %s82_s30 }
  0x38   :  { %s5145_s17 = scalar_lea.hbm %s5991_s3, 32 }
  0x39   :  { %p5146_p10 = scmp.ne.s32.totalorder %s5991_s3, %s5145_s17  ;;  %p5149_p11 = scmp.lt.u32.totalorder %s5145_s17, %s5991_s3 }
  0x3b   :  { %p5151_p12 = pnand %p5149_p11, %p5146_p10 }
  0x3d   :  { %5154 = shalt.err (!%p5151_p12)
}
  0x3e   :  { %s5155_s0 = scalar_lea.vmem %s54_s28, 32  ;;  %p5160_p0 = scmp.lt.s32.totalorder %s54_s28, %s54_s28 }
  0x3f   :  { %p5156_p13 = scmp.ne.s32.totalorder %s54_s28, %s5155_s0  ;;  %p5161_p1 = scmp.lt.s32.totalorder %s5155_s0, %s5155_s0 }
  0x41   :  { %p5162_p2 = por %p5161_p1, %p5160_p0 }
  0x43   :  { %p5163_p3 = pnand %p5162_p2, %p5156_p13 }
  0x45   :  { %5166 = shalt.err (!%p5163_p3)
}
  0x46   :  { %59 = dma.hbm_to_vmem [thread:$0]  %s5991_s3, 32, %s54_s28, [#allocation6], %s5248_s22, %s5248_s22, %s5249_s29  }
  0x47   :  { %s5167_s18 = scalar_lea.hbm %s5995_s7, 64 }
  0x48   :  { %p5168_p4 = scmp.ne.s32.totalorder %s5995_s7, %s5167_s18  ;;  %p5171_p5 = scmp.lt.u32.totalorder %s5167_s18, %s5995_s7 }
  0x4a   :  { %p5173_p6 = pnand %p5171_p5, %p5168_p4 }
  0x4c   :  { %5176 = shalt.err (!%p5173_p6)
}
  0x4d   :  { %s5177_s17 = scalar_lea.vmem %s83_s30, 64  ;;  %p5182_p8 = scmp.lt.s32.totalorder %s83_s30, %s83_s30 }
  0x4e   :  { %p5178_p7 = scmp.ne.s32.totalorder %s83_s30, %s5177_s17  ;;  %p5183_p9 = scmp.lt.s32.totalorder %s5177_s17, %s5177_s17 }
  0x50   :  { %p5184_p10 = por %p5183_p9, %p5182_p8 }
  0x52   :  { %p5185_p11 = pnand %p5184_p10, %p5178_p7 }
  0x54   :  { %5188 = shalt.err (!%p5185_p11)
}
  0x55   :  { %85 = dma.hbm_to_vmem [thread:$0]  %s5995_s7, 64, %s83_s30, [#allocation9]  }
  0x56   :  { %s5252_s29 = smov [#allocation11]   ;;  %s5189_s23 = scalar_lea.hbm %s5996_s8, 512 }
  0x57   :  { %s91_s28 = sshll.u32 %s5252_s29, 4  ;;  %p5190_p12 = scmp.ne.s32.totalorder %s5996_s8, %s5189_s23  ;;  %s92_s28 = int_to_ptr.vmem [resolvable:$true] %s91_s28 }
  0x58   :  { %p5193_p13 = scmp.lt.u32.totalorder %s5189_s23, %s5996_s8 }
  0x5a   :  { %p5195_p0 = pnand %p5193_p13, %p5190_p12 }
  0x5c   :  { %5198 = shalt.err (!%p5195_p0)
}
  0x5d   :  { %s5199_s26 = scalar_lea.vmem %s92_s28, 512  ;;  %p5204_p2 = scmp.lt.s32.totalorder %s92_s28, %s92_s28 }
  0x5e   :  { %p5200_p1 = scmp.ne.s32.totalorder %s92_s28, %s5199_s26  ;;  %p5205_p3 = scmp.lt.s32.totalorder %s5199_s26, %s5199_s26 }
  0x60   :  { %p5206_p4 = por %p5205_p3, %p5204_p2 }
  0x62   :  { %p5207_p5 = pnand %p5206_p4, %p5200_p1 }
  0x64   :  { %5210 = shalt.err (!%p5207_p5)
}
  0x65   :  { %97 = dma.hbm_to_vmem [thread:$0]  %s5996_s8, 512, %s92_s28, [#allocation12], %s5244_s13, %s5244_s13, %s5245_s14  }
  0x66   :  { %5233 = dma.done.wait [#allocation3], 256  }
  0x67   :  { %5234 = vsyncadd [#allocation3], 4294967040 }
  0x68   :  { %5235 = dma.done.wait [#allocation6], 288  }
  0x69   :  { %5236 = vsyncadd [#allocation6], 4294967008 }
  0x6a   :  { %5237 = dma.done.wait [#allocation9], 96  }
  0x6b   :  { %5238 = vsyncadd [#allocation9], 4294967200 }
  0x6c   :  { %5239 = dma.done.wait [#allocation12], 512  }
  0x6d   :  { %5240 = vsyncadd [#allocation12], 4294966784  ;;  %vm158_vm0 = vcmask 261120   ;;  %v5421_v0 = vld [vmem:[#allocation2] sm:$0xff]  ;;  %v5423_v1 = vld [vmem:[#allocation2 + $0x8] sm:$0xff]  ;;  %v194_v25 = vlaneseq  ;;  %v5253_v51 = vmov 0.0  }
  0x6e   :  { %v159_v2 = vsel %vm158_vm0, %v5421_v0, 0.0  ;;  %v162_v3 = vsel %vm158_vm0, %v5423_v1, 0.0  ;;  %v5436_v14 = vld [vmem:[%s5992_s4] sm:$0xff]  ;;  %v5441_v15 = vld [vmem:[%s5992_s4 + $0x8] sm:$0xff]  ;;  %v5446_v16 = vld [vmem:[%s5992_s4 + $0x10] sm:$0xff]  ;;  %4490 = vmatprep.subr.mxu0 %v5253_v51  ;;  %vm5254_vm5 = vmmov 0  }
  0x6f   :  { %160 = vadd.xlane.f32.xlu0 %v159_v2  ;;  %v4767_v17 = vpack.c.bf16 %v5441_v15, %v5436_v14  ;;  %v5453_v18 = vld [vmem:[%s5992_s4 + $0x18] sm:$0xff]  ;;  %v5457_v30 = vshrl.u32 %v194_v25, 7  ;;  %v5463_v38 = vld [vmem:[%s5994_s6] sm:$0x7]  ;;  %v5466_v41 = vld [vmem:[#allocation10] sm:$0x7]  ;;  %4492 = vmatprep.mubr.msk.f32.mxu0 %vm5254_vm5, %v5253_v51 }
  0x70   :  { %v4771_v19 = vpack.c.bf16 %v5453_v18, %v5446_v16  ;;  %v5477_v52 = vld [vmem:[#allocation8] ss:$0 sm:$0xff]  ;;  %s5255_s29 = smov 96   ;;  %vm302_vm6 = vcmask 64512   ;;  %v5501_v62 = vld [vmem:[#allocation5 + $0x8] sm:$0xff]  ;;  %s5256_s28 = smov 88  }
  0x71   :  { %4768 = vmatprep.subr.bf16.mxu1 %v4767_v17  ;;  %v196_v36 = vsub.s32 0, %v5457_v30  ;;  %s5257_s19 = smov 120   ;;  %s5258_s21 = smov 80   ;;  %vm5732_vm11 = vmpackc.low %vm302_vm6, %vm302_vm6  ;;  %vm2414_vm12 = vcmask 130048  }
  0x72   :  { %4770 = vmatpush3.bf16.msra.mxu1 %v4767_v17  ;;  %s5259_s23 = smov 64   ;;  %s5260_s24 = smov 56  }
  0x73   :  { %163 = vadd.xlane.f32.xlu0 %v162_v3  ;;  %4772 = vmatprep.subr.bf16.mxu1 %v4771_v19  ;;  %v197_v40 = vrot.slane %v5463_v38, %v196_v36  ;;  %v209_v43 = vrot.slane %v5466_v41, %v196_v36  ;;  %s5261_s0 = smov 112   ;;  %s5262_s20 = smov 32  }
  0x74   :  { %s5263_s25 = smov 48   ;;  %s5264_s26 = smov 72  }
  0x75   :  { %s5265_s7 = smov 104   ;;  %s5266_s30 = smov 40  }
  0x76   :  { %4774 = vmatpush3.bf16.msra.mxu1 %v4771_v19 }
  0x77   :  { %4480 = vmatprep.subr.mxu1 %v5253_v51 }
  0xfc   :  { %v161_v4 = vpop.xlane.xlu0 %160 }
  0xfd   :  { %v166_v5 = vmul.f32 0.03125, %v161_v4 }
  0xff   :  { %v168_v6 = vsub.f32 %v5421_v0, %v166_v5 }
 0x100   :  { %v164_v7 = vpop.xlane.xlu0 %163 }
 0x101   :  { %v167_v8 = vmul.f32 0.03125, %v164_v7  ;;  %v170_v9 = vmul.f32 %v168_v6, %v168_v6  ;;  %v198_v42 = vmul.f32 %v197_v40, %v168_v6  ;;  %v5509_v6 = vld [vmem:[#allocation5] sm:$0xff] }
 0x103   :  { %v169_v10 = vsub.f32 %v5423_v1, %v167_v8  ;;  %v172_v11 = vsel %vm158_vm0, %v170_v9, 0.0 }
 0x104   :  { %173 = vadd.xlane.f32.xlu1 %v172_v11 }
 0x105   :  { %v171_v12 = vmul.f32 %v169_v10, %v169_v10  ;;  %v199_v46 = vmul.f32 %v197_v40, %v169_v10 }
 0x107   :  { %v175_v13 = vsel %vm158_vm0, %v171_v12, 0.0 }
 0x108   :  { %176 = vadd.xlane.f32.xlu1 %v175_v13 }
 0x191   :  { %v174_v20 = vpop.xlane.xlu1 %173 }
 0x192   :  { %v178_v21 = vmul.f32 0.032258064, %v174_v20 }
 0x194   :  { %4989 = vrsqrt.f32 %v178_v21  ;;  %vm182_vm1 = vcmp.eq.f32.partialorder %v178_v21, inf  ;;  %v185_v27 = vand.u32 2147483648, %v178_v21  ;;  %vm184_vm2 = vcmp.eq.f32.partialorder %v178_v21, 0.0 }
 0x195   :  { %v177_v22 = vpop.xlane.xlu1 %176 }
 0x196   :  { %v179_v23 = vmul.f32 0.032258064, %v177_v22 }
 0x198   :  { %4991 = vrsqrt.f32 %v179_v23  ;;  %vm189_vm3 = vcmp.eq.f32.partialorder %v179_v23, inf  ;;  %v192_v34 = vand.u32 2147483648, %v179_v23  ;;  %vm191_vm4 = vcmp.eq.f32.partialorder %v179_v23, 0.0 }
 0x19e   :  { %v4990_v24 = vpop.eup %4989 }
 0x19f   :  { %v181_v26 = vmul.f32 %v4990_v24, %v178_v21 }
 0x1a1   :  { %v183_v28 = vsel %vm182_vm1, %v178_v21, %v181_v26 }
 0x1a2   :  { %v4992_v29 = vpop.eup %4991  ;;  %v186_v31 = vsel %vm184_vm2, %v185_v27, %v183_v28  ;;  %vm4133_vm2 = vcmask 523264  }
 0x1a3   :  { %v188_v32 = vmul.f32 %v4992_v29, %v179_v23  ;;  %v200_v33 = vadd.f32 1e-06, %v186_v31 }
 0x1a5   :  { %v190_v35 = vsel %vm189_vm3, %v179_v23, %v188_v32  ;;  %4993 = vrcp.f32 %v200_v33 }
 0x1a6   :  { %v193_v37 = vsel %vm191_vm4, %v192_v34, %v190_v35 }
 0x1a7   :  { %v201_v39 = vadd.f32 1e-06, %v193_v37 }
 0x1a9   :  { %4995 = vrcp.f32 %v201_v39 }
 0x1af   :  { %v4994_v44 = vpop.eup %4993 }
 0x1b0   :  { %v203_v45 = vmul.f32 %v4994_v44, %v198_v42 }
 0x1b2   :  { %v210_v47 = vadd.f32 %v209_v43, %v203_v45 }
 0x1b3   :  { %v4996_v48 = vpop.eup %4995 }
 0x1b4   :  { %v205_v49 = vmul.f32 %v4996_v48, %v199_v46  ;;  %4477 = vmatprep.mubr.msk.f32.mxu1 %vm158_vm0, %v210_v47 }
 0x1b6   :  { %v211_v50 = vadd.f32 %v209_v43, %v205_v49 }
 0x1b8   :  { %4478 = vmatmul.mubr.msk.f32.vlgmr.msra.gmra.mrb[0].mxu1 %vm158_vm0, %v211_v50 }
 0x1b9   :  { %4482 = vmatprep.mubr.msk.f32.mxu1 %vm5254_vm5, %v5253_v51 }
 0x28b   :  { %v4479_v53 = vpop.f32.mrb[0].mxu1 }
 0x28c   :  { %v5480_v54 = vadd.f32 %v4479_v53, %v5477_v52  ;;  %v290_v55 = vpop.f32.mrb[1].mxu1 }
 0x28d   :  { %v5483_v56 = vadd.f32 %v5477_v52, %v290_v55 }
 0x28e   :  { %378 = vrot.lane.b32.xlu1 %v5480_v54, %s5255_s29 }
 0x28f   :  { %300 = vrot.lane.b32.xlu0 %v5483_v56, %s5255_s29 }
 0x300   :  { %v379_v58 = vpop.permute.xlu1 %378 }
 0x301   :  { %v301_v57 = vpop.permute.xlu0 %300 }
 0x302   :  { %4481 = vmatpush3.xpose.msk.msra.mxu1 %vm302_vm6, %v301_v57 }
 0x303   :  { %4485 = vmatprep.subr.mxu1 %v5253_v51 }
 0x305   :  { %4483 = vmatmul.mubr.msk.f32.vlgmr.msra.gmra.mrb[2].mxu1 %vm302_vm6, %v5483_v56 }
 0x306   :  { %4486 = vmatpush3.xpose.msk.msra.mxu1 %vm302_vm6, %v379_v58  ;;  %4487 = vmatprep.mubr.msk.f32.mxu1 %vm5254_vm5, %v5253_v51 }
 0x307   :  { %4495 = vmatprep.subr.mxu1 %v5253_v51 }
 0x309   :  { %4488 = vmatmul.mubr.msk.f32.vlgmr.msra.gmra.mrb[4].mxu1 %vm302_vm6, %v5480_v54 }
 0x30a   :  { %4497 = vmatprep.mubr.msk.f32.mxu1 %vm5254_vm5, %v5253_v51 }
 0x3d8   :  { %v373_v59 = vpop.f32.mrb[2].mxu1 }
 0x3d9   :  { %v4484_v60 = vpop.f32.mrb[3].mxu1  ;;  %v454_v5 = vmul.f32 0.35355338, %v373_v59 }
 0x3db   :  { %v456_v7 = vadd.f32 %v454_v5, %v5509_v6 }
 0x3dc   :  { %v450_v61 = vpop.f32.mrb[4].mxu1 }
 0x3dd   :  { %v455_v63 = vmul.f32 0.35355338, %v450_v61  ;;  %v4489_v2 = vpop.f32.mrb[5].mxu1  ;;  %v458_v8 = vsel %vm302_vm6, %v456_v7, -inf }
 0x3df   :  { %v457_v3 = vadd.f32 %v455_v63, %v5501_v62 }
 0x3e1   :  { %v461_v4 = vsel %vm302_vm6, %v457_v3, -inf }
 0x3e2   :  { %462 = vmax.xlane.f32.xlu1 %v461_v4 }
 0x3f3   :  { %712 = vrot.lane.b32.xlu1 %v5480_v54, %s5256_s28 }
 0x3f7   :  { %710 = vrot.lane.b32.xlu1 %v5480_v54, %s5257_s19 }
 0x41b   :  { %459 = vmax.xlane.f32.xlu1 %v458_v8 }
 0x42c   :  { %634 = vrot.lane.b32.xlu1 %v5483_v56, %s5256_s28 }
 0x430   :  { %632 = vrot.lane.b32.xlu1 %v5483_v56, %s5257_s19 }
 0x434   :  { %1138 = vrot.lane.b32.xlu1 %v5483_v56, %s5258_s21 }
 0x46f   :  { %v463_v9 = vpop.xlane.xlu1 %462 }
 0x470   :  { %v465_v10 = vsub.f32 %v457_v3, %v463_v9 }
 0x472   :  { %v468_v11 = vmul.f32 1.442695, %v465_v10 }
 0x473   :  { %v713_v17 = vpop.permute.xlu1 %712 }
 0x474   :  { %4997 = vpow2.f32 %v468_v11 }
 0x477   :  { %v711_v19 = vpop.permute.xlu1 %710 }
 0x47e   :  { %v4998_v12 = vpop.eup %4997 }
 0x47f   :  { %v473_v13 = vsel %vm302_vm6, %v4998_v12, 0.0 }
 0x480   :  { %474 = vadd.xlane.f32.xlu0 %v473_v13 }
 0x496   :  { %556 = vrot.lane.b32.xlu0 %v5480_v54, %s5259_s23 }
 0x4a8   :  { %v460_v20 = vpop.xlane.xlu1 %459 }
 0x4a9   :  { %v464_v21 = vsub.f32 %v456_v7, %v460_v20 }
 0x4ab   :  { %v466_v22 = vmul.f32 1.442695, %v464_v21 }
 0x4ac   :  { %v635_v33 = vpop.permute.xlu1 %634 }
 0x4ad   :  { %4999 = vpow2.f32 %v466_v22 }
 0x4b0   :  { %v633_v35 = vpop.permute.xlu1 %632 }
 0x4b4   :  { %v1139_v63 = vpop.permute.xlu1 %1138 }
 0x4b7   :  { %v5000_v23 = vpop.eup %4999 }
 0x4b8   :  { %v470_v24 = vsel %vm302_vm6, %v5000_v23, 0.0 }
 0x4b9   :  { %471 = vadd.xlane.f32.xlu0 %v470_v24 }
 0x4cf   :  { %480 = vrot.lane.b32.xlu0 %v5483_v56, %s5259_s23 }
 0x50d   :  { %v475_v25 = vpop.xlane.xlu0 %474 }
 0x50e   :  { %5001 = vrcp.f32 %v475_v25 }
 0x511   :  { %v557_v26 = vpop.permute.xlu0 %556 }
 0x512   :  { %4496 = vmatpush3.msra.mxu1 %v557_v26 }
 0x513   :  { %4505 = vmatprep.subr.mxu1 %v5253_v51 }
 0x518   :  { %v5002_v27 = vpop.eup %5001 }
 0x519   :  { %v479_v28 = vmul.f32 %v5002_v27, %v4998_v12 }
 0x51b   :  { %4498 = vmatmul.mubr.msk.f32.vlgmr.msra.gmra.mrb[6].mxu1 %vm302_vm6, %v479_v28 }
 0x51c   :  { %4506 = vmatpush3.xpose.msk.msra.mxu1 %vm302_vm6, %v713_v17  ;;  %4507 = vmatprep.mubr.msk.f32.mxu1 %vm5254_vm5, %v5253_v51 }
 0x51d   :  { %4515 = vmatprep.subr.mxu1 %v5253_v51 }
 0x51f   :  { %4508 = vmatmul.mubr.msk.f32.vlgmr.msra.gmra.mrb[8].mxu1 %vm302_vm6, %v711_v19 }
 0x520   :  { %4517 = vmatprep.mubr.msk.f32.mxu1 %vm5254_vm5, %v5253_v51 }
 0x546   :  { %v472_v29 = vpop.xlane.xlu0 %471 }
 0x547   :  { %5003 = vrcp.f32 %v472_v29 }
 0x54a   :  { %v481_v31 = vpop.permute.xlu0 %480 }
 0x54b   :  { %4491 = vmatpush3.msra.mxu0 %v481_v31 }
 0x54c   :  { %4500 = vmatprep.subr.mxu0 %v5253_v51 }
 0x551   :  { %v5004_v32 = vpop.eup %5003 }
 0x552   :  { %v478_v34 = vmul.f32 %v5004_v32, %v5000_v23 }
 0x554   :  { %4493 = vmatmul.mubr.msk.f32.vlgmr.msra.gmra.mrb[0].mxu0 %vm302_vm6, %v478_v34 }
 0x555   :  { %4501 = vmatpush3.xpose.msk.msra.mxu0 %vm302_vm6, %v635_v33  ;;  %4502 = vmatprep.mubr.msk.f32.mxu0 %vm5254_vm5, %v5253_v51 }
 0x556   :  { %4510 = vmatprep.subr.mxu0 %v5253_v51 }
 0x558   :  { %4503 = vmatmul.mubr.msk.f32.vlgmr.msra.gmra.mrb[2].mxu0 %vm302_vm6, %v633_v35 }
 0x559   :  { %4512 = vmatprep.mubr.msk.f32.mxu0 %vm5254_vm5, %v5253_v51 }
 0x5ee   :  { %v5541_v36 = vpop.f32.mrb[6].mxu1 }
 0x5ef   :  { %v4499_v37 = vpop.f32.mrb[7].mxu1 }
 0x5f2   :  { %v784_v39 = vpop.f32.mrb[8].mxu1 }
 0x5f3   :  { %v789_v40 = vmul.f32 0.35355338, %v784_v39  ;;  %v4509_v42 = vpop.f32.mrb[9].mxu1 }
 0x5f5   :  { %v791_v43 = vadd.f32 %v789_v40, %v5501_v62 }
 0x5f7   :  { %v795_v44 = vsel %vm302_vm6, %v791_v43, -inf }
 0x5f8   :  { %796 = vmax.xlane.f32.xlu0 %v795_v44 }
 0x60e   :  { %890 = vrot.lane.b32.xlu0 %v5480_v54, %s5260_s24 }
 0x612   :  { %1136 = vrot.lane.b32.xlu0 %v5483_v56, %s5261_s0 }
 0x616   :  { %1214 = vrot.lane.b32.xlu0 %v5480_v54, %s5261_s0 }
 0x627   :  { %v5551_v45 = vpop.f32.mrb[0].mxu0 }
 0x628   :  { %v4494_v46 = vpop.f32.mrb[1].mxu0 }
 0x62b   :  { %v706_v47 = vpop.f32.mrb[2].mxu0 }
 0x62c   :  { %v4504_v48 = vpop.f32.mrb[3].mxu0  ;;  %v788_v59 = vmul.f32 0.35355338, %v706_v47 }
 0x62e   :  { %v790_v60 = vadd.f32 %v788_v59, %v5509_v6 }
 0x630   :  { %v792_v61 = vsel %vm302_vm6, %v790_v60, -inf }
 0x685   :  { %v797_v49 = vpop.xlane.xlu0 %796 }
 0x686   :  { %v799_v50 = vsub.f32 %v791_v43, %v797_v49 }
 0x688   :  { %v802_v53 = vmul.f32 1.442695, %v799_v50 }
 0x689   :  { %v891_v55 = vpop.permute.xlu0 %890 }
 0x68a   :  { %5005 = vpow2.f32 %v802_v53  ;;  %4516 = vmatpush3.msra.mxu1 %v891_v55 }
 0x68b   :  { %4530 = vmatprep.subr.mxu1 %v5253_v51 }
 0x68d   :  { %v1137_v5 = vpop.permute.xlu0 %1136 }
 0x691   :  { %v1215_v8 = vpop.permute.xlu0 %1214 }
 0x694   :  { %v5006_v57 = vpop.eup %5005 }
 0x695   :  { %v807_v58 = vsel %vm302_vm6, %v5006_v57, 0.0 }
 0x696   :  { %808 = vadd.xlane.f32.xlu1 %v807_v58 }
 0x6a7   :  { %1216 = vrot.lane.b32.xlu1 %v5480_v54, %s5258_s21 }
 0x6cb   :  { %793 = vmax.xlane.f32.xlu1 %v792_v61 }
 0x723   :  { %v809_v2 = vpop.xlane.xlu1 %808 }
 0x724   :  { %5007 = vrcp.f32 %v809_v2 }
 0x727   :  { %v1217_v7 = vpop.permute.xlu1 %1216 }
 0x72e   :  { %v5008_v3 = vpop.eup %5007 }
 0x72f   :  { %v813_v4 = vmul.f32 %v5008_v3, %v5006_v57 }
 0x731   :  { %4518 = vmatmul.mubr.msk.f32.vlgmr.msra.gmra.mrb[10].mxu1 %vm302_vm6, %v813_v4 }
 0x732   :  { %4531 = vmatpush3.xpose.msk.msra.mxu1 %vm302_vm6, %v1139_v63  ;;  %4532 = vmatprep.mubr.msk.f32.mxu1 %vm5254_vm5, %v5253_v51 }
 0x733   :  { %4535 = vmatprep.subr.mxu1 %v5253_v51 }
 0x735   :  { %4533 = vmatmul.mubr.msk.f32.vlgmr.msra.gmra.mrb[12].mxu1 %vm302_vm6, %v1137_v5 }
 0x736   :  { %4536 = vmatpush3.xpose.msk.msra.mxu1 %vm302_vm6, %v1217_v7  ;;  %4537 = vmatprep.mubr.msk.f32.mxu1 %vm5254_vm5, %v5253_v51 }
 0x737   :  { %4545 = vmatprep.subr.mxu1 %v5253_v51 }
 0x739   :  { %4538 = vmatmul.mubr.msk.f32.vlgmr.msra.gmra.mrb[14].mxu1 %vm302_vm6, %v1215_v8 }
 0x73a   :  { %4547 = vmatprep.mubr.msk.f32.mxu1 %vm5254_vm5, %v5253_v51 }
 0x758   :  { %v794_v9 = vpop.xlane.xlu1 %793 }
 0x759   :  { %v798_v10 = vsub.f32 %v790_v60, %v794_v9 }
 0x75b   :  { %v800_v11 = vmul.f32 1.442695, %v798_v10 }
 0x75d   :  { %5009 = vpow2.f32 %v800_v11 }
 0x767   :  { %v5010_v12 = vpop.eup %5009 }
 0x768   :  { %v804_v13 = vsel %vm302_vm6, %v5010_v12, 0.0 }
 0x769   :  { %805 = vadd.xlane.f32.xlu0 %v804_v13 }
 0x77f   :  { %814 = vrot.lane.b32.xlu0 %v5483_v56, %s5260_s24 }
 0x783   :  { %1052 = vrot.lane.b32.xlu0 %v5436_v14, %s5262_s20 }
 0x787   :  { %1318 = vrot.lane.b32.xlu0 %v5483_v56, %s5263_s25 }
 0x78b   :  { %1394 = vrot.lane.b32.xlu0 %v5480_v54, %s5263_s25 }
 0x78f   :  { %1471 = vrot.lane.b32.xlu0 %v5446_v16, %s5262_s20 }
 0x793   :  { %1637 = vrot.lane.b32.xlu0 %v5480_v54, %s5264_s26 }
 0x797   :  { %1635 = vrot.lane.b32.xlu0 %v5480_v54, %s5265_s7 }
 0x7f6   :  { %v806_v17 = vpop.xlane.xlu0 %805 }
 0x7f7   :  { %5011 = vrcp.f32 %v806_v17 }
 0x7fa   :  { %v815_v19 = vpop.permute.xlu0 %814 }
 0x7fb   :  { %4511 = vmatpush3.msra.mxu0 %v815_v19 }
 0x7fe   :  { %v1053_v14 = vpop.permute.xlu0 %1052 }
 0x801   :  { %v5012_v20 = vpop.eup %5011 }
 0x802   :  { %v812_v21 = vmul.f32 %v5012_v20, %v5010_v12  ;;  %v1319_v22 = vpop.permute.xlu0 %1318 }
 0x804   :  { %4513 = vmatmul.mubr.msk.f32.vlgmr.msra.gmra.mrb[4].mxu0 %vm302_vm6, %v812_v21  ;;  %v962_v23 = vpop.f32.mrb[10].mxu1 }
 0x805   :  { %v4519_v16 = vpop.f32.mrb[11].mxu1 }
 0x806   :  { %v1395_v24 = vpop.permute.xlu0 %1394 }
 0x807   :  { %4546 = vmatpush3.msra.mxu1 %v1395_v24 }
 0x808   :  { %v1210_v25 = vpop.f32.mrb[12].mxu1  ;;  %4555 = vmatprep.subr.mxu1 %v5253_v51 }
 0x809   :  { %v1292_v26 = vmul.f32 0.35355338, %v1210_v25  ;;  %v4534_v27 = vpop.f32.mrb[13].mxu1 }
 0x80a   :  { %v1472_v63 = vpop.permute.xlu0 %1471 }
 0x80b   :  { %v1294_v28 = vadd.f32 %v1292_v26, %v5509_v6 }
 0x80c   :  { %v1288_v29 = vpop.f32.mrb[14].mxu1 }
 0x80d   :  { %v1293_v31 = vmul.f32 0.35355338, %v1288_v29  ;;  %v4539_v32 = vpop.f32.mrb[15].mxu1  ;;  %v1296_v33 = vsel %vm302_vm6, %v1294_v28, -inf }
 0x80e   :  { %1297 = vmax.xlane.f32.xlu1 %v1296_v33  ;;  %v1638_v4 = vpop.permute.xlu0 %1637 }
 0x80f   :  { %v1295_v34 = vadd.f32 %v1293_v31, %v5501_v62 }
 0x811   :  { %v1299_v35 = vsel %vm302_vm6, %v1295_v34, -inf }
 0x812   :  { %1300 = vmax.xlane.f32.xlu1 %v1299_v35  ;;  %v1636_v13 = vpop.permute.xlu0 %1635 }
 0x89b   :  { %v1298_v37 = vpop.xlane.xlu1 %1297 }
 0x89c   :  { %v1302_v39 = vsub.f32 %v1294_v28, %v1298_v37 }
 0x89e   :  { %v1304_v40 = vmul.f32 1.442695, %v1302_v39 }
 0x89f   :  { %v1301_v42 = vpop.xlane.xlu1 %1300 }
 0x8a0   :  { %5013 = vpow2.f32 %v1304_v40  ;;  %v1303_v43 = vsub.f32 %v1295_v34, %v1301_v42 }
 0x8a2   :  { %v1306_v44 = vmul.f32 1.442695, %v1303_v43 }
 0x8a4   :  { %5015 = vpow2.f32 %v1306_v44 }
 0x8aa   :  { %v5014_v46 = vpop.eup %5013 }
 0x8ab   :  { %v1308_v47 = vsel %vm302_vm6, %v5014_v46, 0.0 }
 0x8ac   :  { %1309 = vadd.xlane.f32.xlu1 %v1308_v47 }
 0x8ae   :  { %v5016_v48 = vpop.eup %5015 }
 0x8af   :  { %v1311_v49 = vsel %vm302_vm6, %v5016_v48, 0.0 }
 0x8b0   :  { %1312 = vadd.xlane.f32.xlu1 %v1311_v49 }
 0x8c1   :  { %967 = vrot.lane.b32.xlu1 %v5441_v15, %s5262_s20 }
 0x8c5   :  { %1559 = vrot.lane.b32.xlu1 %v5483_v56, %s5264_s26 }
 0x8c9   :  { %1557 = vrot.lane.b32.xlu1 %v5483_v56, %s5265_s7 }
 0x8d7   :  { %v886_v50 = vpop.f32.mrb[4].mxu0 }
 0x8d8   :  { %v4514_v53 = vpop.f32.mrb[5].mxu0  ;;  %4522 = vmatprep.mubr.msk.f32.mxu0 %vm302_vm6, %v886_v50 }
 0x939   :  { %v1310_v55 = vpop.xlane.xlu1 %1309 }
 0x93d   :  { %v1313_v57 = vpop.xlane.xlu1 %1312 }
 0x93e   :  { %5017 = vrcp.f32 %v1313_v57 }
 0x93f   :  { %5019 = vrcp.f32 %v1310_v55  ;;  %v5658_v55 = vld [vmem:[%s5992_s4 + $0x20] sm:$0xff] }
 0x941   :  { %v968_v58 = vpop.permute.xlu1 %967 }
 0x942   :  { %4520 = vmatprep.subr.mxu0 %v968_v58 }
 0x943   :  { %4521 = vmatpush3.msra.mxu0 %v968_v58 }
 0x944   :  { %4523 = vmatmul.mubr.msk.f32.vlgmr.msra.gmra.mrb[6].mxu0 %vm302_vm6, %v962_v23  ;;  %4525 = vmatprep.subr.mxu0 %v1053_v14 }
 0x945   :  { %4527 = vmatprep.mubr.msk.f32.mxu0 %vm302_vm6, %v5551_v45  ;;  %4526 = vmatpush3.msra.mxu0 %v1053_v14  ;;  %v1560_v59 = vpop.permute.xlu1 %1559 }
 0x946   :  { %4540 = vmatprep.subr.mxu0 %v5253_v51 }
 0x948   :  { %v5018_v15 = vpop.eup %5017 }
 0x949   :  { %v1317_v60 = vmul.f32 %v5018_v15, %v5016_v48  ;;  %v5020_v61 = vpop.eup %5019  ;;  %v1558_v2 = vpop.permute.xlu1 %1557 }
 0x94a   :  { %v1316_v45 = vmul.f32 %v5020_v61, %v5014_v46 }
 0x94b   :  { %4548 = vmatmul.mubr.msk.f32.vlgmr.msra.gmra.mrb[16].mxu1 %vm302_vm6, %v1317_v60 }
 0x94c   :  { %4556 = vmatpush3.xpose.msk.msra.mxu1 %vm302_vm6, %v1560_v59  ;;  %4528 = vmatmul.mubr.msk.f32.vlgmr.msra.gmra.mrb[6].mxu0 %vm302_vm6, %v5541_v36 }
 0x94d   :  { %4541 = vmatpush3.msra.mxu0 %v1319_v22  ;;  %4557 = vmatprep.mubr.msk.f32.mxu1 %vm5254_vm5, %v5253_v51 }
 0x94e   :  { %4542 = vmatprep.mubr.msk.f32.mxu0 %vm5254_vm5, %v5253_v51  ;;  %4550 = vmatprep.subr.mxu0 %v1472_v63 }
 0x94f   :  { %4558 = vmatmul.mubr.msk.f32.vlgmr.msra.gmra.mrb[18].mxu1 %vm302_vm6, %v1558_v2  ;;  %4565 = vmatprep.subr.mxu1 %v5253_v51 }
 0x950   :  { %4543 = vmatmul.mubr.msk.f32.vlgmr.msra.gmra.mrb[8].mxu0 %vm302_vm6, %v1316_v45  ;;  %4567 = vmatprep.mubr.msk.f32.mxu1 %vm5254_vm5, %v5253_v51 }
 0x951   :  { %4551 = vmatpush3.msra.mxu0 %v1472_v63 }
 0x952   :  { %4560 = vmatprep.subr.mxu0 %v5253_v51 }
 0xa1e   :  { %v1466_v36 = vpop.f32.mrb[16].mxu1 }
 0xa1f   :  { %v4549_v3 = vpop.f32.mrb[17].mxu1 }
 0xa20   :  { %v5683_v3 = vld [vmem:[%s5992_s4 + $0x30] sm:$0xff] }
 0xa22   :  { %v1631_v5 = vpop.f32.mrb[18].mxu1 }
 0xa23   :  { %v1713_v7 = vmul.f32 0.35355338, %v1631_v5  ;;  %v1390_v8 = vpop.f32.mrb[8].mxu0  ;;  %v4559_v9 = vpop.f32.mrb[19].mxu1 }
 0xa24   :  { %v4544_v10 = vpop.f32.mrb[9].mxu0  ;;  %4552 = vmatprep.mubr.msk.f32.mxu0 %vm302_vm6, %v1390_v8 }
 0xa25   :  { %4553 = vmatmul.mubr.msk.f32.vlgmr.msra.gmra.mrb[6].mxu0 %vm302_vm6, %v1466_v36  ;;  %v1715_v11 = vadd.f32 %v1713_v7, %v5509_v6 }
 0xa26   :  { %4561 = vmatpush3.xpose.msk.msra.mxu0 %vm302_vm6, %v1638_v4  ;;  %4562 = vmatprep.mubr.msk.f32.mxu0 %vm5254_vm5, %v5253_v51  ;;  %v5688_v4 = vld [vmem:[%s5992_s4 + $0x38] sm:$0xff] }
 0xa27   :  { %v1717_v12 = vsel %vm302_vm6, %v1715_v11, -inf  ;;  %4570 = vmatprep.subr.mxu0 %v5253_v51  ;;  %v4914_v5 = vpack.i.bf16 %v5688_v4, %v5683_v3 }
 0xa28   :  { %1718 = vmax.xlane.f32.xlu1 %v1717_v12 }
 0xa29   :  { %4563 = vmatmul.mubr.msk.f32.vlgmr.msra.gmra.mrb[10].mxu0 %vm302_vm6, %v1636_v13  ;;  %v4779_v13 = vpack.c.bf16 %v5688_v4, %v5683_v3 }
 0xa2a   :  { %4572 = vmatprep.mubr.msk.f32.mxu0 %vm5254_vm5, %v5253_v51 }
 0xa39   :  { %1739 = vrot.lane.b32.xlu1 %v5483_v56, %s5266_s30 }
 0xa3d   :  { %1892 = vrot.lane.b32.xlu1 %v5453_v18, %s5262_s20 }
 0xa41   :  { %1978 = vrot.lane.b32.xlu1 %v5477_v52, %s5262_s20 }
 0xab5   :  { %v1719_v6 = vpop.xlane.xlu1 %1718 }
 0xab6   :  { %v1723_v19 = vsub.f32 %v1715_v11, %v1719_v6  ;;  %v124_v11 = vld [vmem:[%s5989_s1] sm:$0xff] }
 0xab7   :  { %v5701_v6 = vld [vmem:[#allocation8 + $0x1] ss:$0 sm:$0xff] }
 0xab8   :  { %v1725_v14 = vmul.f32 1.442695, %v1723_v19 }
 0xab9   :  { %v1740_v17 = vpop.permute.xlu1 %1739 }
 0xaba   :  { %4566 = vmatpush3.msra.mxu1 %v1740_v17  ;;  %5021 = vpow2.f32 %v1725_v14 }
 0xabd   :  { %v1893_v32 = vpop.permute.xlu1 %1892 }
 0xac4   :  { %v5022_v56 = vpop.eup %5021 }
 0xac5   :  { %v1729_v18 = vsel %vm302_vm6, %v5022_v56, 0.0 }
 0xafc   :  { %v1709_v20 = vpop.f32.mrb[10].mxu0 }
 0xafd   :  { %v1714_v21 = vmul.f32 0.35355338, %v1709_v20  ;;  %v4564_v22 = vpop.f32.mrb[11].mxu0 }
 0xaff   :  { %v1716_v23 = vadd.f32 %v1714_v21, %v5501_v62 }
 0xb01   :  { %v1720_v16 = vsel %vm302_vm6, %v1716_v23, -inf }
 0xb02   :  { %1721 = vmax.xlane.f32.xlu0 %v1720_v16 }
 0xb06   :  { %1730 = vadd.xlane.f32.xlu0 %v1729_v18 }
 0xb8f   :  { %v1722_v24 = vpop.xlane.xlu0 %1721 }
 0xb90   :  { %v1724_v52 = vsub.f32 %v1716_v23, %v1722_v24  ;;  %v125_v24 = vld [vmem:[%s5989_s1 + $0x8] sm:$0xff] }
 0xb92   :  { %v1727_v25 = vmul.f32 1.442695, %v1724_v52 }
 0xb93   :  { %v1731_v26 = vpop.xlane.xlu0 %1730 }
 0xb94   :  { %5023 = vpow2.f32 %v1727_v25  ;;  %v126_v25 = vld [vmem:[%s5989_s1 + $0x10] sm:$0xff] }
 0xb95   :  { %5025 = vrcp.f32 %v1731_v26 }
 0xb9e   :  { %v5024_v27 = vpop.eup %5023 }
 0xb9f   :  { %v5026_v28 = vpop.eup %5025  ;;  %v1732_v29 = vsel %vm302_vm6, %v5024_v27, 0.0 }
 0xba0   :  { %v1737_v31 = vmul.f32 %v5026_v28, %v5022_v56  ;;  %1733 = vadd.xlane.f32.xlu0 %v1732_v29 }
 0xba2   :  { %4568 = vmatmul.mubr.msk.f32.vlgmr.msra.gmra.mrb[20].mxu1 %vm302_vm6, %v1737_v31  ;;  %v127_v31 = vld [vmem:[%s5989_s1 + $0x18] sm:$0xff] }
 0xbb6   :  { %1815 = vrot.lane.b32.xlu0 %v5480_v54, %s5266_s30  ;;  %v1979_v54 = vpop.permute.xlu1 %1978 }
 0xc2d   :  { %v1734_v62 = vpop.xlane.xlu0 %1733 }
 0xc2e   :  { %5027 = vrcp.f32 %v1734_v62 }
 0xc31   :  { %v1816_v33 = vpop.permute.xlu0 %1815 }
 0xc32   :  { %4571 = vmatpush3.msra.mxu0 %v1816_v33 }
 0xc33   :  { %4575 = vmatprep.subr.mxu0 %v1893_v32 }
 0xc38   :  { %v5028_v34 = vpop.eup %5027 }
 0xc39   :  { %v1738_v35 = vmul.f32 %v5028_v34, %v5024_v27  ;;  %v2021_v34 = vsub.s32 1, %v5457_v30 }
 0xc3b   :  { %4573 = vmatmul.mubr.msk.f32.vlgmr.msra.gmra.mrb[12].mxu0 %vm302_vm6, %v1738_v35 }
 0xc3c   :  { %4576 = vmatpush3.msra.mxu0 %v1893_v32 }
 0xc75   :  { %v1811_v37 = vpop.f32.mrb[20].mxu1 }
 0xc76   :  { %v4569_v39 = vpop.f32.mrb[21].mxu1  ;;  %4577 = vmatprep.mubr.msk.f32.mxu0 %vm302_vm6, %v1811_v37 }
 0xc77   :  { %v2022_v39 = vrot.slane %v5463_v38, %v2021_v34  ;;  %v5267_v38 = vmov 0.0|0.0  }
 0xd0e   :  { %v1887_v40 = vpop.f32.mrb[12].mxu0 }
 0xd0f   :  { %v4574_v42 = vpop.f32.mrb[13].mxu0  ;;  %4578 = vmatmul.mubr.msk.f32.vlgmr.msra.gmra.mrb[6].mxu0 %vm302_vm6, %v1887_v40  ;;  %v2034_v40 = vrot.slane %v5466_v41, %v2021_v34 }
 0xd10   :  { %4599 = vmatprep.mubr.msk.f32.mxu0 %vm158_vm0, %v124_v11 }
 0xde2   :  { %v4579_v43 = vpop.f32.mrb[6].mxu0 }
 0xde3   :  { %v1982_v44 = vadd.f32 %v4579_v43, %v1979_v54  ;;  %v1967_v46 = vpop.f32.mrb[7].mxu0 }
 0xde4   :  { %v1981_v47 = vadd.f32 %v1979_v54, %v1967_v46 }
 0xde5   :  { %v5646_v48 = vadd.f32 %v1982_v44, %v5423_v1  ;;  %v5663_v1 = vld [vmem:[%s5992_s4 + $0x28] sm:$0xff] }
 0xde6   :  { %v5649_v49 = vadd.f32 %v1981_v47, %v5421_v0  ;;  %v4909_v0 = vpack.i.bf16 %v5663_v1, %v5658_v55  ;;  %v4775_v12 = vpack.c.bf16 %v5663_v1, %v5658_v55 }
 0xde7   :  { %v1988_v50 = vsel %vm158_vm0, %v5646_v48, 0.0 }
 0xde8   :  { %1989 = vadd.xlane.f32.xlu0 %v1988_v50  ;;  %v1985_v53 = vsel %vm158_vm0, %v5649_v49, 0.0  ;;  %4776 = vmatprep.subr.bf16.mxu1 %v4775_v12 }
 0xde9   :  { %1986 = vadd.xlane.f32.xlu1 %v1985_v53  ;;  %4778 = vmatpush3.bf16.msra.mxu1 %v4775_v12 }
 0xdea   :  { %4780 = vmatprep.subr.bf16.mxu1 %v4779_v13 }
 0xded   :  { %4782 = vmatpush3.bf16.msra.mxu1 %v4779_v13  ;;  %v5760_v13 = vld [vmem:[#allocation7 + $0x1] ss:$0 sm:$0xff] }
 0xdee   :  { %4791 = vmatprep.subr.bf16.mxu1 %v5267_v38 }
 0xdfa   :  { %4910 = vrot.lane.b32.xlu1 %v4909_v0, %s5255_s29 }
 0xdfe   :  { %2140 = vrot.lane.b32.xlu1 %v5701_v6, %s5255_s29 }
 0xe75   :  { %v1990_v57 = vpop.xlane.xlu0 %1989 }
 0xe76   :  { %v1992_v58 = vmul.f32 0.03125, %v1990_v57  ;;  %v1987_v15 = vpop.xlane.xlu1 %1986 }
 0xe77   :  { %v1991_v59 = vmul.f32 0.03125, %v1987_v15 }
 0xe78   :  { %v5669_v60 = vsub.f32 %v5646_v48, %v1992_v58 }
 0xe79   :  { %v5672_v61 = vsub.f32 %v5649_v49, %v1991_v59 }
 0xe7a   :  { %v1996_v2 = vmul.f32 %v5669_v60, %v5669_v60  ;;  %v4911_v7 = vpop.permute.xlu1 %4910  ;;  %v2024_v44 = vmul.f32 %v2022_v39, %v5669_v60 }
 0xe7b   :  { %v1995_v63 = vmul.f32 %v5672_v61, %v5672_v61  ;;  %v4913_v8 = vunpack.i.h.bf16 %v4911_v7  ;;  %v4912_v9 = vunpack.i.l.bf16 %v4911_v7  ;;  %v2023_v42 = vmul.f32 %v2022_v39, %v5672_v61 }
 0xe7c   :  { %v2000_v36 = vsel %vm158_vm0, %v1996_v2, 0.0 }
 0xe7d   :  { %v1997_v45 = vsel %vm158_vm0, %v1995_v63, 0.0  ;;  %v4783_v10 = vpack.c.bf16 %v4913_v8, %v4912_v9 }
 0xe7e   :  { %1998 = vadd.xlane.f32.xlu0 %v1997_v45  ;;  %v2141_v41 = vpop.permute.xlu1 %2140 }
 0xe7f   :  { %4784 = vmatprep.subr.bf16.mxu0 %v4783_v10 }
 0xe80   :  { %4786 = vmatpush3.bf16.msra.mxu0 %v4783_v10 }
 0xe82   :  { %2001 = vadd.xlane.f32.xlu0 %v2000_v36 }
 0xe98   :  { %4915 = vrot.lane.b32.xlu0 %v4914_v5, %s5255_s29 }
 0xf0b   :  { %v1999_v17 = vpop.xlane.xlu0 %1998 }
 0xf0c   :  { %v2003_v19 = vmul.f32 0.032258064, %v1999_v17 }
 0xf0e   :  { %5029 = vrsqrt.f32 %v2003_v19  ;;  %vm2007_vm7 = vcmp.eq.f32.partialorder %v2003_v19, inf  ;;  %v2010_v52 = vand.u32 2147483648, %v2003_v19  ;;  %vm2009_vm8 = vcmp.eq.f32.partialorder %v2003_v19, 0.0 }
 0xf0f   :  { %v2002_v14 = vpop.xlane.xlu0 %2001 }
 0xf10   :  { %v2004_v20 = vmul.f32 0.032258064, %v2002_v14 }
 0xf12   :  { %5031 = vrsqrt.f32 %v2004_v20  ;;  %vm2014_vm9 = vcmp.eq.f32.partialorder %v2004_v20, inf  ;;  %v2017_v32 = vand.u32 2147483648, %v2004_v20  ;;  %vm2016_vm10 = vcmp.eq.f32.partialorder %v2004_v20, 0.0 }
 0xf13   :  { %v4916_v21 = vpop.permute.xlu0 %4915 }
 0xf14   :  { %v4918_v22 = vunpack.i.h.bf16 %v4916_v21  ;;  %v4917_v23 = vunpack.i.l.bf16 %v4916_v21 }
 0xf16   :  { %v4787_v16 = vpack.c.bf16 %v4918_v22, %v4917_v23 }
 0xf18   :  { %v5030_v56 = vpop.eup %5029  ;;  %4788 = vmatprep.subr.bf16.mxu0 %v4787_v16 }
 0xf19   :  { %v2006_v18 = vmul.f32 %v5030_v56, %v2003_v19  ;;  %4790 = vmatpush3.bf16.msra.mxu0 %v4787_v16 }
 0xf1a   :  { %4795 = vmatprep.subr.bf16.mxu0 %v5267_v38 }
 0xf1b   :  { %v2008_v26 = vsel %vm2007_vm7, %v2003_v19, %v2006_v18 }
 0xf1c   :  { %v5032_v27 = vpop.eup %5031  ;;  %v2011_v28 = vsel %vm2009_vm8, %v2010_v52, %v2008_v26  ;;  %4600 = vmatmul.mubr.msk.f32.vlgmr.msra.gmra.mrb[14].mxu0 %vm158_vm0, %v125_v24 }
 0xf1d   :  { %v2013_v29 = vmul.f32 %v5032_v27, %v2004_v20  ;;  %4602 = vmatprep.mubr.msk.f32.mxu0 %vm158_vm0, %v126_v25  ;;  %v2025_v62 = vadd.f32 1e-06, %v2011_v28 }
 0xf1f   :  { %v2015_v33 = vsel %vm2014_vm9, %v2004_v20, %v2013_v29  ;;  %5033 = vrcp.f32 %v2025_v62  ;;  %v5762_v20 = vld [vmem:[#allocation7] ss:$0 sm:$0xff] }
 0xf20   :  { %v2018_v35 = vsel %vm2016_vm10, %v2017_v32, %v2015_v33  ;;  %4603 = vmatmul.mubr.msk.f32.gmra.mrb[16].mxu0 %vm158_vm0, %v127_v31 }
 0xf21   :  { %v2026_v37 = vadd.f32 1e-06, %v2018_v35  ;;  %4616 = vmatprep.mubr.msk.f32.mxu0 %vm5254_vm5, %v5253_v51 }
 0xf23   :  { %5035 = vrcp.f32 %v2026_v37 }
 0xf29   :  { %v5034_v54 = vpop.eup %5033 }
 0xf2a   :  { %v2028_v43 = vmul.f32 %v5034_v54, %v2023_v42 }
 0xf2c   :  { %v2035_v46 = vadd.f32 %v2034_v40, %v2028_v43 }
 0xf2d   :  { %v5036_v47 = vpop.eup %5035 }
 0xf2e   :  { %4588 = vmatprep.mubr.msk.f32.mxu1 %vm158_vm0, %v2035_v46  ;;  %v2030_v50 = vmul.f32 %v5036_v47, %v2024_v44 }
 0xf30   :  { %v2036_v53 = vadd.f32 %v2034_v40, %v2030_v50 }
 0xf32   :  { %4589 = vmatmul.mubr.msk.f32.vlgmr.msra.gmra.mrb[22].mxu1 %vm158_vm0, %v2036_v53 }
 0xf33   :  { %4609 = vmatprep.mubr.msk.f32.mxu1 %vm5254_vm5, %v5253_v51 }
 0xfef   :  { %v4601_v0 = vpop.f32.mrb[14].mxu0 }
 0xff0   :  { %v2221_v57 = vpop.f32.mrb[15].mxu0  ;;  %v2227_v58 = vadd.f32 %v4601_v0, %v2141_v41 }
 0xff1   :  { %v2222_v15 = vadd.f32 %v2221_v57, %v2141_v41 }
 0xff3   :  { %v4604_v60 = vpop.f32.mrb[16].mxu0  ;;  %v4792_v61 = vpack.c.bf16 %v2227_v58, %v2222_v15  ;;  %v5736_v63 = vpack.i.bf16 %v2227_v58, %v2222_v15 }
 0xff4   :  { %v2237_v45 = vadd.f32 %v4604_v60, %v2141_v41  ;;  %v2231_v2 = vpop.f32.mrb[17].mxu0 }
 0xff5   :  { %v2232_v36 = vadd.f32 %v2231_v2, %v2141_v41  ;;  %4794 = vmatpush3.bf16.xpose.msk.msra.mxu1 %vm5732_vm11, %v4792_v61 }
 0xff6   :  { %4799 = vmatprep.subr.bf16.mxu1 %v5267_v38 }
 0xff7   :  { %v4796_v5 = vpack.c.bf16 %v2237_v45, %v2232_v36  ;;  %v5741_v7 = vpack.i.bf16 %v2237_v45, %v2232_v36 }
 0xff9   :  { %4798 = vmatpush3.bf16.xpose.msk.msra.mxu0 %vm5732_vm11, %v4796_v5 }
 0xffa   :  { %4805 = vmatprep.subr.bf16.mxu0 %v5267_v38 }
0x1005   :  { %v4590_v8 = vpop.f32.mrb[22].mxu1 }
0x1006   :  { %v5747_v9 = vadd.f32 %v4590_v8, %v5701_v6  ;;  %v2115_v10 = vpop.f32.mrb[23].mxu1 }
0x1007   :  { %v5750_v11 = vadd.f32 %v5701_v6, %v2115_v10 }
0x1008   :  { %4617 = vmatmul.mubr.msk.f32.vlgmr.msra.gmra.mrb[18].mxu0 %vm302_vm6, %v5747_v9 }
0x1009   :  { %4610 = vmatmul.mubr.msk.f32.vlgmr.msra.gmra.mrb[24].mxu1 %vm302_vm6, %v5750_v11  ;;  %4637 = vmatprep.mubr.msk.f32.mxu0 %vm5254_vm5, %v5253_v51 }
0x100a   :  { %4623 = vmatprep.mubr.msk.f32.mxu1 %vm5254_vm5, %v5253_v51 }
0x10db   :  { %v2394_v12 = vpop.f32.mrb[18].mxu0 }
0x10dc   :  { %v2399_v17 = vmul.f32 0.35355338, %v2394_v12  ;;  %v2315_v19 = vpop.f32.mrb[24].mxu1  ;;  %v4618_v14 = vpop.f32.mrb[19].mxu0 }
0x10dd   :  { %v2398_v21 = vmul.f32 0.35355338, %v2315_v19  ;;  %v4611_v22 = vpop.f32.mrb[25].mxu1 }
0x10de   :  { %v2413_v23 = vadd.f32 %v5760_v13, %v2399_v17 }
0x10df   :  { %v2412_v16 = vadd.f32 %v5762_v20, %v2398_v21 }
0x10e0   :  { %v2418_v56 = vsel %vm2414_vm12, %v2413_v23, -inf }
0x10e1   :  { %2419 = vmax.xlane.f32.xlu0 %v2418_v56  ;;  %v2415_v18 = vsel %vm2414_vm12, %v2412_v16, -inf }
0x10e2   :  { %2416 = vmax.xlane.f32.xlu1 %v2415_v18 }
0x116e   :  { %v2420_v24 = vpop.xlane.xlu0 %2419 }
0x116f   :  { %v2422_v52 = vsub.f32 %v2413_v23, %v2420_v24  ;;  %v2417_v25 = vpop.xlane.xlu1 %2416 }
0x1170   :  { %v2421_v26 = vsub.f32 %v2412_v16, %v2417_v25 }
0x1171   :  { %v2425_v27 = vmul.f32 1.442695, %v2422_v52 }
0x1172   :  { %v2423_v28 = vmul.f32 1.442695, %v2421_v26 }
0x1173   :  { %5037 = vpow2.f32 %v2425_v27 }
0x1174   :  { %5039 = vpow2.f32 %v2423_v28 }
0x117d   :  { %v5038_v29 = vpop.eup %5037 }
0x117e   :  { %v5040_v31 = vpop.eup %5039  ;;  %v2430_v62 = vsel %vm2414_vm12, %v5038_v29, 0.0 }
0x117f   :  { %2431 = vadd.xlane.f32.xlu1 %v2430_v62  ;;  %v2427_v32 = vsel %vm2414_vm12, %v5040_v31, 0.0 }
0x1180   :  { %2428 = vadd.xlane.f32.xlu0 %v2427_v32 }
0x1190   :  { %4925 = vrot.lane.b32.xlu1 %v5741_v7, %s5255_s29 }
0x1194   :  { %4930 = vrot.lane.b32.xlu1 %v5736_v63, %s5257_s19 }
0x1196   :  { %4920 = vrot.lane.b32.xlu0 %v5736_v63, %s5255_s29 }
0x1198   :  { %4935 = vrot.lane.b32.xlu1 %v5741_v7, %s5257_s19 }
0x119a   :  { %2595 = vrot.lane.b32.xlu0 %v5750_v11, %s5257_s19 }
0x119c   :  { %2677 = vrot.lane.b32.xlu1 %v5747_v9, %s5257_s19 }
0x120c   :  { %v2432_v33 = vpop.xlane.xlu1 %2431 }
0x120d   :  { %v2429_v34 = vpop.xlane.xlu0 %2428 }
0x120e   :  { %5041 = vrcp.f32 %v2429_v34 }
0x120f   :  { %5043 = vrcp.f32 %v2432_v33 }
0x1210   :  { %v4926_v35 = vpop.permute.xlu1 %4925 }
0x1211   :  { %v4921_v37 = vpop.permute.xlu0 %4920  ;;  %v4928_v46 = vunpack.i.h.bf16 %v4926_v35  ;;  %v4927_v47 = vunpack.i.l.bf16 %v4926_v35 }
0x1212   :  { %v4923_v39 = vunpack.i.h.bf16 %v4921_v37  ;;  %v4922_v40 = vunpack.i.l.bf16 %v4921_v37 }
0x1213   :  { %v4803_v57 = vpack.c.bf16 %v4928_v46, %v4927_v47 }
0x1214   :  { %v4800_v42 = vpack.c.bf16 %v4923_v39, %v4922_v40  ;;  %v4931_v54 = vpop.permute.xlu1 %4930 }
0x1215   :  { %v4933_v43 = vunpack.i.h.bf16 %v4931_v54  ;;  %v4932_v44 = vunpack.i.l.bf16 %v4931_v54  ;;  %v2596_v60 = vpop.permute.xlu0 %2595 }
0x1216   :  { %4801 = vmatpush3.bf16.msra.mxu1 %v4800_v42 }
0x1217   :  { %v4806_v50 = vpack.c.bf16 %v4933_v43, %v4932_v44  ;;  %4802 = vmatprep.subr.bf16.mxu1 %v5267_v38 }
0x1218   :  { %v5042_v53 = vpop.eup %5041  ;;  %v4936_v58 = vpop.permute.xlu1 %4935 }
0x1219   :  { %v2435_v41 = vmul.f32 %v5042_v53, %v5040_v31  ;;  %4808 = vmatpush3.bf16.xpose.msk.msra.mxu0 %vm5732_vm11, %v4806_v50  ;;  %v5044_v0 = vpop.eup %5043  ;;  %v4938_v61 = vunpack.i.h.bf16 %v4936_v58  ;;  %v4937_v45 = vunpack.i.l.bf16 %v4936_v58 }
0x121a   :  { %4813 = vmatprep.subr.bf16.mxu0 %v5267_v38  ;;  %v2436_v15 = vmul.f32 %v5044_v0, %v5038_v29 }
0x121b   :  { %4624 = vmatmul.mubr.msk.f32.vlgmr.msra.gmra.mrb[26].mxu1 %vm2414_vm12, %v2435_v41  ;;  %v4810_v2 = vpack.c.bf16 %v4938_v61, %v4937_v45 }
0x121c   :  { %4804 = vmatpush3.bf16.msra.mxu1 %v4803_v57  ;;  %4630 = vmatprep.mubr.msk.f32.mxu1 %vm5254_vm5, %v5253_v51  ;;  %v2678_v36 = vpop.permute.xlu1 %2677 }
0x121d   :  { %4809 = vmatprep.subr.bf16.mxu1 %v5267_v38 }
0x121f   :  { %4631 = vmatmul.mubr.msk.f32.vlgmr.msra.gmra.mrb[28].mxu1 %vm2414_vm12, %v2436_v15 }
0x1220   :  { %4638 = vmatmul.mubr.msk.f32.vlgmr.msra.gmra.mrb[20].mxu0 %vm302_vm6, %v2596_v60  ;;  %4644 = vmatprep.mubr.msk.f32.mxu1 %vm5254_vm5, %v5253_v51 }
0x1221   :  { %4651 = vmatprep.mubr.msk.f32.mxu0 %vm5254_vm5, %v5253_v51 }
0x1225   :  { %4812 = vmatpush3.bf16.xpose.msk.msra.mxu1 %vm5732_vm11, %v4810_v2 }
0x1226   :  { %4816 = vmatprep.subr.bf16.mxu1 %v5267_v38 }
0x122c   :  { %4645 = vmatmul.mubr.msk.f32.vlgmr.msra.gmra.mrb[30].mxu1 %vm302_vm6, %v2678_v36 }
0x122d   :  { %4658 = vmatprep.mubr.msk.f32.mxu1 %vm5254_vm5, %v5253_v51 }
0x12ee   :  { %v5802_v5 = vpop.f32.mrb[26].mxu1 }
0x12ef   :  { %v4625_v8 = vpop.f32.mrb[27].mxu1 }
0x12f2   :  { %v5804_v10 = vpop.f32.mrb[28].mxu1 }
0x12f3   :  { %v4632_v12 = vpop.f32.mrb[29].mxu1  ;;  %v2673_v17 = vpop.f32.mrb[20].mxu0 }
0x12f4   :  { %v2759_v19 = vmul.f32 0.35355338, %v2673_v17  ;;  %v4639_v14 = vpop.f32.mrb[21].mxu0 }
0x12f6   :  { %v2761_v21 = vadd.f32 %v5762_v20, %v2759_v19 }
0x12f8   :  { %v2763_v22 = vsel %vm2414_vm12, %v2761_v21, -inf }
0x12f9   :  { %2764 = vmax.xlane.f32.xlu0 %v2763_v22 }
0x12ff   :  { %v2755_v23 = vpop.f32.mrb[30].mxu1 }
0x1300   :  { %v2760_v16 = vmul.f32 0.35355338, %v2755_v23  ;;  %v4646_v56 = vpop.f32.mrb[31].mxu1 }
0x1302   :  { %v2762_v18 = vadd.f32 %v5760_v13, %v2760_v16 }
0x1304   :  { %v2766_v24 = vsel %vm2414_vm12, %v2762_v18, -inf }
0x1305   :  { %2767 = vmax.xlane.f32.xlu1 %v2766_v24 }
0x1316   :  { %4945 = vrot.lane.b32.xlu1 %v5741_v7, %s5256_s28 }
0x131a   :  { %2943 = vrot.lane.b32.xlu1 %v5663_v1, %s5262_s20 }
0x131e   :  { %3027 = vrot.lane.b32.xlu1 %v5658_v55, %s5262_s20 }
0x1322   :  { %4955 = vrot.lane.b32.xlu1 %v5741_v7, %s5261_s0 }
0x1326   :  { %3193 = vrot.lane.b32.xlu1 %v5747_v9, %s5261_s0 }
0x1386   :  { %v2765_v52 = vpop.xlane.xlu0 %2764 }
0x1387   :  { %v2769_v25 = vsub.f32 %v2761_v21, %v2765_v52 }
0x1389   :  { %v2771_v26 = vmul.f32 1.442695, %v2769_v25 }
0x138b   :  { %5045 = vpow2.f32 %v2771_v26 }
0x1392   :  { %v2768_v27 = vpop.xlane.xlu1 %2767 }
0x1393   :  { %v2770_v28 = vsub.f32 %v2762_v18, %v2768_v27 }
0x1395   :  { %v5046_v29 = vpop.eup %5045  ;;  %v2773_v31 = vmul.f32 1.442695, %v2770_v28 }
0x1396   :  { %v4946_v62 = vpop.permute.xlu1 %4945  ;;  %v2775_v1 = vsel %vm2414_vm12, %v5046_v29, 0.0 }
0x1397   :  { %5047 = vpow2.f32 %v2773_v31  ;;  %v4948_v32 = vunpack.i.h.bf16 %v4946_v62  ;;  %v4947_v55 = vunpack.i.l.bf16 %v4946_v62  ;;  %2776 = vadd.xlane.f32.xlu0 %v2775_v1 }
0x1399   :  { %v4817_v33 = vpack.c.bf16 %v4948_v32, %v4947_v55 }
0x139a   :  { %v2944_v44 = vpop.permute.xlu1 %2943 }
0x139b   :  { %4818 = vmatpush3.bf16.msra.mxu1 %v4817_v33 }
0x139c   :  { %4819 = vmatprep.subr.bf16.mxu1 %v5267_v38 }
0x139e   :  { %v3028_v15 = vpop.permute.xlu1 %3027 }
0x13a1   :  { %v5048_v34 = vpop.eup %5047 }
0x13a2   :  { %v2778_v35 = vsel %vm2414_vm12, %v5048_v34, 0.0  ;;  %v4956_v36 = vpop.permute.xlu1 %4955 }
0x13a3   :  { %2779 = vadd.xlane.f32.xlu0 %v2778_v35  ;;  %v4958_v12 = vunpack.i.h.bf16 %v4956_v36  ;;  %v4957_v17 = vunpack.i.l.bf16 %v4956_v36 }
0x13a5   :  { %v4824_v19 = vpack.c.bf16 %v4958_v12, %v4957_v17 }
0x13a6   :  { %v3194_v16 = vpop.permute.xlu1 %3193 }
0x13b9   :  { %4940 = vrot.lane.b32.xlu0 %v5736_v63, %s5256_s28 }
0x13bd   :  { %4950 = vrot.lane.b32.xlu0 %v5736_v63, %s5261_s0 }
0x13c1   :  { %3111 = vrot.lane.b32.xlu0 %v5750_v11, %s5261_s0 }
0x1424   :  { %v2777_v37 = vpop.xlane.xlu0 %2776 }
0x1425   :  { %5049 = vrcp.f32 %v2777_v37 }
0x142f   :  { %v5050_v43 = vpop.eup %5049 }
0x1430   :  { %v2780_v39 = vpop.xlane.xlu0 %2779  ;;  %v2783_v41 = vmul.f32 %v5050_v43, %v5046_v29 }
0x1431   :  { %5051 = vrcp.f32 %v2780_v39 }
0x1434   :  { %v4941_v40 = vpop.permute.xlu0 %4940 }
0x1435   :  { %v4943_v42 = vunpack.i.h.bf16 %v4941_v40  ;;  %v4942_v54 = vunpack.i.l.bf16 %v4941_v40 }
0x1437   :  { %v4814_v46 = vpack.c.bf16 %v4943_v42, %v4942_v54 }
0x1438   :  { %v4951_v47 = vpop.permute.xlu0 %4950 }
0x1439   :  { %v4953_v50 = vunpack.i.h.bf16 %v4951_v47  ;;  %v4952_v53 = vunpack.i.l.bf16 %v4951_v47  ;;  %4815 = vmatpush3.bf16.msra.mxu0 %v4814_v46 }
0x143a   :  { %4661 = vmatprep.subr.mxu0 %v2944_v44 }
0x143b   :  { %v5052_v0 = vpop.eup %5051  ;;  %v4820_v57 = vpack.c.bf16 %v4953_v50, %v4952_v53 }
0x143c   :  { %v2784_v58 = vmul.f32 %v5052_v0, %v5048_v34  ;;  %4652 = vmatmul.mubr.msk.f32.vlgmr.msra.gmra.mrb[22].mxu0 %vm2414_vm12, %v2783_v41  ;;  %v3112_v60 = vpop.permute.xlu0 %3111 }
0x143d   :  { %4662 = vmatpush3.msra.mxu0 %v2944_v44 }
0x143e   :  { %4659 = vmatmul.mubr.msk.f32.vlgmr.msra.gmra.mrb[32].mxu1 %vm2414_vm12, %v2784_v58  ;;  %4666 = vmatprep.subr.mxu0 %v3028_v15 }
0x143f   :  { %4822 = vmatpush3.bf16.xpose.msk.msra.mxu1 %vm5732_vm11, %v4820_v57  ;;  %4675 = vmatprep.mubr.msk.f32.mxu1 %vm5254_vm5, %v5253_v51 }
0x1440   :  { %4827 = vmatprep.subr.bf16.mxu1 %v5267_v38 }
0x1446   :  { %4676 = vmatmul.mubr.msk.f32.vlgmr.msra.gmra.mrb[34].mxu1 %vm302_vm6, %v3112_v60 }
0x1447   :  { %4689 = vmatprep.mubr.msk.f32.mxu1 %vm5254_vm5, %v5253_v51 }
0x150f   :  { %v2860_v61 = vpop.f32.mrb[22].mxu0 }
0x1510   :  { %v4653_v45 = vpop.f32.mrb[23].mxu0  ;;  %4663 = vmatprep.mubr.msk.f32.mxu0 %vm302_vm6, %v2860_v61 }
0x1511   :  { %v2939_v2 = vpop.f32.mrb[32].mxu1 }
0x1512   :  { %v4660_v8 = vpop.f32.mrb[33].mxu1  ;;  %4664 = vmatmul.mubr.msk.f32.vlgmr.msra.gmra.mrb[24].mxu0 %vm302_vm6, %v2939_v2 }
0x1513   :  { %4667 = vmatpush3.msra.mxu0 %v3028_v15  ;;  %4668 = vmatprep.mubr.msk.f32.mxu0 %vm302_vm6, %v5802_v5 }
0x1514   :  { %4823 = vmatprep.subr.bf16.mxu0 %v5267_v38 }
0x1519   :  { %v3189_v14 = vpop.f32.mrb[34].mxu1 }
0x151a   :  { %v3275_v21 = vmul.f32 0.35355338, %v3189_v14  ;;  %v4677_v22 = vpop.f32.mrb[35].mxu1  ;;  %4669 = vmatmul.mubr.msk.f32.vlgmr.msra.gmra.mrb[24].mxu0 %vm302_vm6, %v5804_v10 }
0x151b   :  { %4826 = vmatpush3.bf16.xpose.msk.msra.mxu0 %vm5732_vm11, %v4824_v19  ;;  %4682 = vmatprep.mubr.msk.f32.mxu0 %vm5254_vm5, %v5253_v51 }
0x151c   :  { %v3277_v23 = vadd.f32 %v5762_v20, %v3275_v21 }
0x151e   :  { %v3279_v5 = vsel %vm2414_vm12, %v3277_v23, -inf }
0x151f   :  { %3280 = vmax.xlane.f32.xlu0 %v3279_v5 }
0x1522   :  { %4683 = vmatmul.mubr.msk.f32.vlgmr.msra.gmra.mrb[26].mxu0 %vm302_vm6, %v3194_v16 }
0x15ac   :  { %v3281_v56 = vpop.xlane.xlu0 %3280 }
0x15ad   :  { %v3285_v18 = vsub.f32 %v3277_v23, %v3281_v56 }
0x15af   :  { %v3287_v24 = vmul.f32 1.442695, %v3285_v18 }
0x15b1   :  { %5053 = vpow2.f32 %v3287_v24 }
0x15bb   :  { %v5054_v52 = vpop.eup %5053 }
0x15bc   :  { %v3291_v10 = vsel %vm2414_vm12, %v5054_v52, 0.0 }
0x15bd   :  { %3292 = vadd.xlane.f32.xlu0 %v3291_v10 }
0x15f5   :  { %v3271_v25 = vpop.f32.mrb[26].mxu0 }
0x15f6   :  { %v3276_v26 = vmul.f32 0.35355338, %v3271_v25  ;;  %v4684_v27 = vpop.f32.mrb[27].mxu0 }
0x15f8   :  { %v3278_v28 = vadd.f32 %v5760_v13, %v3276_v26 }
0x15fa   :  { %v3282_v29 = vsel %vm2414_vm12, %v3278_v28, -inf }
0x15fb   :  { %3283 = vmax.xlane.f32.xlu1 %v3282_v29 }
0x160c   :  { %4965 = vrot.lane.b32.xlu1 %v5741_v7, %s5258_s21 }
0x1610   :  { %3459 = vrot.lane.b32.xlu1 %v5683_v3, %s5262_s20 }
0x1614   :  { %4970 = vrot.lane.b32.xlu1 %v5736_v63, %s5265_s7 }
0x1618   :  { %3545 = vrot.lane.b32.xlu1 %v5750_v11, %s5265_s7 }
0x164a   :  { %v3293_v3 = vpop.xlane.xlu0 %3292 }
0x1688   :  { %v3284_v31 = vpop.xlane.xlu1 %3283 }
0x1689   :  { %v3286_v62 = vsub.f32 %v3278_v28, %v3284_v31 }
0x168b   :  { %v3289_v1 = vmul.f32 1.442695, %v3286_v62 }
0x168c   :  { %v4966_v32 = vpop.permute.xlu1 %4965 }
0x168d   :  { %5055 = vpow2.f32 %v3289_v1  ;;  %v4968_v42 = vunpack.i.h.bf16 %v4966_v32  ;;  %v4967_v54 = vunpack.i.l.bf16 %v4966_v32 }
0x168e   :  { %5057 = vrcp.f32 %v3293_v3 }
0x168f   :  { %v4831_v47 = vpack.c.bf16 %v4968_v42, %v4967_v54 }
0x1690   :  { %v3460_v55 = vpop.permute.xlu1 %3459 }
0x1691   :  { %4699 = vmatprep.subr.mxu0 %v3460_v55 }
0x1692   :  { %4700 = vmatpush3.msra.mxu0 %v3460_v55 }
0x1693   :  { %4837 = vmatprep.subr.bf16.mxu0 %v5267_v38 }
0x1697   :  { %v5056_v33 = vpop.eup %5055 }
0x1698   :  { %v3294_v34 = vsel %vm2414_vm12, %v5056_v33, 0.0  ;;  %v5058_v40 = vpop.eup %5057 }
0x1699   :  { %3295 = vadd.xlane.f32.xlu0 %v3294_v34  ;;  %v3299_v44 = vmul.f32 %v5058_v40, %v5054_v52 }
0x16af   :  { %4960 = vrot.lane.b32.xlu0 %v5736_v63, %s5258_s21 }
0x16b3   :  { %4975 = vrot.lane.b32.xlu0 %v5741_v7, %s5265_s7 }
0x16b7   :  { %3627 = vrot.lane.b32.xlu0 %v5747_v9, %s5265_s7  ;;  %v4971_v9 = vpop.permute.xlu1 %4970 }
0x16b8   :  { %v4973_v53 = vunpack.i.h.bf16 %v4971_v9  ;;  %v4972_v41 = vunpack.i.l.bf16 %v4971_v9 }
0x16ba   :  { %v4834_v0 = vpack.c.bf16 %v4973_v53, %v4972_v41 }
0x16bb   :  { %v3546_v57 = vpop.permute.xlu1 %3545 }
0x1726   :  { %v3296_v11 = vpop.xlane.xlu0 %3295 }
0x1727   :  { %5059 = vrcp.f32 %v3296_v11 }
0x172a   :  { %v4961_v35 = vpop.permute.xlu0 %4960 }
0x172b   :  { %v4963_v37 = vunpack.i.h.bf16 %v4961_v35  ;;  %v4962_v39 = vunpack.i.l.bf16 %v4961_v35 }
0x172d   :  { %v4828_v43 = vpack.c.bf16 %v4963_v37, %v4962_v39 }
0x172e   :  { %v4976_v58 = vpop.permute.xlu0 %4975 }
0x172f   :  { %4829 = vmatpush3.bf16.msra.mxu1 %v4828_v43  ;;  %v4978_v15 = vunpack.i.h.bf16 %v4976_v58  ;;  %v4977_v60 = vunpack.i.l.bf16 %v4976_v58 }
0x1730   :  { %4830 = vmatprep.subr.bf16.mxu1 %v5267_v38 }
0x1731   :  { %v5060_v46 = vpop.eup %5059  ;;  %v4838_v2 = vpack.c.bf16 %v4978_v15, %v4977_v60 }
0x1732   :  { %4690 = vmatmul.mubr.msk.f32.vlgmr.msra.gmra.mrb[36].mxu1 %vm2414_vm12, %v3299_v44  ;;  %v3300_v50 = vmul.f32 %v5060_v46, %v5056_v33  ;;  %v3628_v12 = vpop.permute.xlu0 %3627 }
0x1733   :  { %4832 = vmatpush3.bf16.msra.mxu1 %v4831_v47  ;;  %4696 = vmatprep.mubr.msk.f32.mxu1 %vm5254_vm5, %v5253_v51 }
0x1734   :  { %4833 = vmatprep.subr.bf16.mxu1 %v5267_v38 }
0x1736   :  { %4697 = vmatmul.mubr.msk.f32.vlgmr.msra.gmra.mrb[38].mxu1 %vm2414_vm12, %v3300_v50 }
0x1737   :  { %4708 = vmatprep.mubr.msk.f32.mxu1 %vm5254_vm5, %v5253_v51 }
0x173c   :  { %4836 = vmatpush3.bf16.xpose.msk.msra.mxu1 %vm5732_vm11, %v4834_v0 }
0x173d   :  { %4841 = vmatprep.subr.bf16.mxu1 %v5267_v38 }
0x1743   :  { %4709 = vmatmul.mubr.msk.f32.vlgmr.msra.gmra.mrb[40].mxu1 %vm302_vm6, %v3546_v57 }
0x1744   :  { %4722 = vmatprep.mubr.msk.f32.mxu1 %vm5254_vm5, %v5253_v51 }
0x1805   :  { %v3376_v61 = vpop.f32.mrb[36].mxu1 }
0x1806   :  { %v4691_v45 = vpop.f32.mrb[37].mxu1  ;;  %4701 = vmatprep.mubr.msk.f32.mxu0 %vm302_vm6, %v3376_v61 }
0x1807   :  { %v144_v45 = vld [vmem:[#allocation11] sm:$0xff] }
0x1809   :  { %v3455_v36 = vpop.f32.mrb[38].mxu1 }
0x180a   :  { %v4698_v8 = vpop.f32.mrb[39].mxu1  ;;  %4702 = vmatmul.mubr.msk.f32.vlgmr.msra.gmra.mrb[24].mxu0 %vm302_vm6, %v3455_v36  ;;  %v146_v36 = vld [vmem:[#allocation11 + $0x10] sm:$0xff] }
0x180b   :  { %4840 = vmatpush3.bf16.xpose.msk.msra.mxu0 %vm5732_vm11, %v4838_v2  ;;  %4715 = vmatprep.mubr.msk.f32.mxu0 %vm5254_vm5, %v5253_v51  ;;  %v145_v2 = vld [vmem:[#allocation11 + $0x8] sm:$0xff] }
0x180c   :  { %4844 = vmatprep.subr.bf16.mxu0 %v5267_v38  ;;  %v4847_v8 = vpack.c.bf16 %v145_v2, %v144_v45 }
0x1812   :  { %4716 = vmatmul.mubr.msk.f32.vlgmr.msra.gmra.mrb[28].mxu0 %vm302_vm6, %v3628_v12  ;;  %v147_v12 = vld [vmem:[#allocation11 + $0x18] sm:$0xff] }
0x1813   :  { %4729 = vmatprep.mubr.msk.f32.mxu0 %vm5254_vm5, %v5253_v51 }
0x1816   :  { %v3623_v17 = vpop.f32.mrb[40].mxu1 }
0x1817   :  { %v3709_v19 = vmul.f32 0.35355338, %v3623_v17  ;;  %v4710_v14 = vpop.f32.mrb[41].mxu1  ;;  %v4851_v17 = vpack.c.bf16 %v147_v12, %v146_v36 }
0x1818   :  { %v150_v14 = vld [vmem:[%s5998_s10 + $0x8] sm:$0xff] }
0x1819   :  { %v3711_v21 = vadd.f32 %v5762_v20, %v3709_v19  ;;  %v149_v19 = vld [vmem:[%s5998_s10] sm:$0xff] }
0x181b   :  { %v3713_v22 = vsel %vm2414_vm12, %v3711_v21, -inf }
0x181c   :  { %3714 = vmax.xlane.f32.xlu1 %v3713_v22  ;;  %v4855_v22 = vpack.c.bf16 %v150_v14, %v149_v19 }
0x182d   :  { %4980 = vrot.lane.b32.xlu1 %v5736_v63, %s5264_s26 }
0x1831   :  { %3893 = vrot.lane.b32.xlu1 %v5688_v4, %s5262_s20 }
0x1835   :  { %3979 = vrot.lane.b32.xlu1 %v5701_v6, %s5262_s20 }
0x18a9   :  { %v3715_v38 = vpop.xlane.xlu1 %3714 }
0x18aa   :  { %v3719_v16 = vsub.f32 %v3711_v21, %v3715_v38  ;;  %v151_v21 = vld [vmem:[%s5998_s10 + $0x10] sm:$0xff]  ;;  %v152_v38 = vld [vmem:[%s5998_s10 + $0x18] sm:$0xff] }
0x18ac   :  { %v3721_v20 = vmul.f32 1.442695, %v3719_v16 }
0x18ad   :  { %v4981_v59 = vpop.permute.xlu1 %4980 }
0x18ae   :  { %v4983_v51 = vunpack.i.h.bf16 %v4981_v59  ;;  %v4982_v23 = vunpack.i.l.bf16 %v4981_v59  ;;  %5061 = vpow2.f32 %v3721_v20  ;;  %v4859_v59 = vpack.c.bf16 %v152_v38, %v151_v21 }
0x18b0   :  { %v4842_v5 = vpack.c.bf16 %v4983_v51, %v4982_v23  ;;  %v153_v51 = vld [vmem:[%s5998_s10 + $0x20] sm:$0xff]  ;;  %v154_v23 = vld [vmem:[%s5998_s10 + $0x28] sm:$0xff] }
0x18b1   :  { %v3894_v34 = vpop.permute.xlu1 %3893 }
0x18b2   :  { %4843 = vmatpush3.bf16.msra.mxu1 %v4842_v5  ;;  %v4863_v5 = vpack.c.bf16 %v154_v23, %v153_v51 }
0x18b3   :  { %4848 = vmatprep.subr.bf16.mxu1 %v4847_v8 }
0x18b5   :  { %v3980_v40 = vpop.permute.xlu1 %3979 }
0x18b8   :  { %v5062_v4 = vpop.eup %5061 }
0x18b9   :  { %v3725_v6 = vsel %vm2414_vm12, %v5062_v4, 0.0 }
0x18e5   :  { %v3705_v56 = vpop.f32.mrb[28].mxu0 }
0x18e6   :  { %v3710_v18 = vmul.f32 0.35355338, %v3705_v56  ;;  %v4717_v24 = vpop.f32.mrb[29].mxu0 }
0x18e8   :  { %v3712_v63 = vadd.f32 %v5760_v13, %v3710_v18 }
0x18ea   :  { %v3716_v52 = vsel %vm2414_vm12, %v3712_v63, -inf }
0x18eb   :  { %3717 = vmax.xlane.f32.xlu0 %v3716_v52 }
0x18ef   :  { %3726 = vadd.xlane.f32.xlu0 %v3725_v6 }
0x1978   :  { %v3718_v10 = vpop.xlane.xlu0 %3717 }
0x1979   :  { %v3720_v25 = vsub.f32 %v3712_v63, %v3718_v10 }
0x197b   :  { %v3723_v26 = vmul.f32 1.442695, %v3720_v25 }
0x197c   :  { %v3727_v27 = vpop.xlane.xlu0 %3726 }
0x197d   :  { %5063 = vpow2.f32 %v3723_v26 }
0x197e   :  { %5065 = vrcp.f32 %v3727_v27 }
0x1987   :  { %v5064_v28 = vpop.eup %5063 }
0x1988   :  { %v5066_v29 = vpop.eup %5065  ;;  %v3728_v31 = vsel %vm2414_vm12, %v5064_v28, 0.0 }
0x1989   :  { %v3733_v62 = vmul.f32 %v5066_v29, %v5062_v4  ;;  %3729 = vadd.xlane.f32.xlu0 %v3728_v31  ;;  %v4022_v29 = vsub.s32 2, %v5457_v30 }
0x198b   :  { %4723 = vmatmul.mubr.msk.f32.vlgmr.msra.gmra.mrb[42].mxu1 %vm2414_vm12, %v3733_v62 }
0x198c   :  { %4850 = vmatpush3.bf16.msra.mxu1 %v4847_v8 }
0x198d   :  { %4852 = vmatprep.subr.bf16.mxu1 %v4851_v17 }
0x1990   :  { %4854 = vmatpush3.bf16.msra.mxu1 %v4851_v17 }
0x199f   :  { %4985 = vrot.lane.b32.xlu0 %v5741_v7, %s5264_s26 }
0x1a16   :  { %v3730_v13 = vpop.xlane.xlu0 %3729 }
0x1a17   :  { %5067 = vrcp.f32 %v3730_v13  ;;  %v5077_v13 = vld [vmem:[%s5994_s6] sm:$0x7] }
0x1a1a   :  { %v4986_v1 = vpop.permute.xlu0 %4985 }
0x1a1b   :  { %v4988_v32 = vunpack.i.h.bf16 %v4986_v1  ;;  %v4987_v55 = vunpack.i.l.bf16 %v4986_v1  ;;  %v4023_v1 = vrot.slane %v5077_v13, %v4022_v29 }
0x1a1d   :  { %v4845_v33 = vpack.c.bf16 %v4988_v32, %v4987_v55  ;;  %v5078_v55 = vld [vmem:[#allocation10] sm:$0x7] }
0x1a1f   :  { %4846 = vmatpush3.bf16.msra.mxu0 %v4845_v33  ;;  %v4035_v33 = vrot.slane %v5078_v55, %v4022_v29 }
0x1a20   :  { %4732 = vmatprep.subr.mxu0 %v3894_v34 }
0x1a21   :  { %v5068_v3 = vpop.eup %5067 }
0x1a22   :  { %v3734_v11 = vmul.f32 %v5068_v3, %v5064_v28 }
0x1a24   :  { %4730 = vmatmul.mubr.msk.f32.vlgmr.msra.gmra.mrb[30].mxu0 %vm2414_vm12, %v3734_v11 }
0x1a25   :  { %4733 = vmatpush3.msra.mxu0 %v3894_v34 }
0x1a26   :  { %4856 = vmatprep.subr.bf16.mxu0 %v4855_v22 }
0x1a5e   :  { %v3810_v35 = vpop.f32.mrb[42].mxu1 }
0x1a5f   :  { %v4724_v37 = vpop.f32.mrb[43].mxu1  ;;  %4734 = vmatprep.mubr.msk.f32.mxu0 %vm302_vm6, %v3810_v35 }
0x1af7   :  { %v3889_v39 = vpop.f32.mrb[30].mxu0 }
0x1af8   :  { %v4731_v7 = vpop.f32.mrb[31].mxu0  ;;  %4735 = vmatmul.mubr.msk.f32.vlgmr.msra.gmra.mrb[24].mxu0 %vm302_vm6, %v3889_v39 }
0x1af9   :  { %4858 = vmatpush3.bf16.msra.mxu0 %v4855_v22  ;;  %v155_v7 = vld [vmem:[%s5998_s10 + $0x30] sm:$0xff] }
0x1afa   :  { %4860 = vmatprep.subr.bf16.mxu0 %v4859_v59 }
0x1afd   :  { %4862 = vmatpush3.bf16.msra.mxu0 %v4859_v59 }
0x1afe   :  { %4864 = vmatprep.subr.bf16.mxu0 %v4863_v5 }
0x1b01   :  { %4866 = vmatpush3.bf16.msra.mxu0 %v4863_v5 }
0x1bcb   :  { %v4736_v42 = vpop.f32.mrb[24].mxu0 }
0x1bcc   :  { %v3983_v54 = vadd.f32 %v4736_v42, %v3980_v40  ;;  %v3968_v43 = vpop.f32.mrb[25].mxu0 }
0x1bcd   :  { %v3982_v44 = vadd.f32 %v3980_v40, %v3968_v43  ;;  %v156_v40 = vld [vmem:[%s5998_s10 + $0x38] sm:$0xff]  ;;  %s5268_s10 = smov [#allocation13]  }
0x1bce   :  { %v5915_v46 = vadd.f32 %v3983_v54, %v5646_v48  ;;  %v4867_v42 = vpack.c.bf16 %v156_v40, %v155_v7  ;;  %v4323_v54 = vld [vmem:[%s5997_s9] ss:$0 sm:$0xff]  ;;  %s4224_s25 = sshll.u32 %s5268_s10, 4  ;;  %s4225_s25 = int_to_ptr.vmem [resolvable:$true] %s4224_s25 }
0x1bcf   :  { %v5918_v47 = vadd.f32 %v3982_v44, %v5649_v49  ;;  %s5211_s9 = scalar_lea.vmem %s4225_s25, 256  ;;  %p5216_p7 = scmp.lt.s32.totalorder %s4225_s25, %s4225_s25 }
0x1bd0   :  { %v3989_v9 = vsel %vm158_vm0, %v5915_v46, 0.0  ;;  %4868 = vmatprep.subr.bf16.mxu0 %v4867_v42  ;;  %p5212_p6 = scmp.ne.s32.totalorder %s4225_s25, %s5211_s9  ;;  %p5217_p8 = scmp.lt.s32.totalorder %s5211_s9, %s5211_s9 }
0x1bd1   :  { %3990 = vadd.xlane.f32.xlu0 %v3989_v9  ;;  %v3986_v50 = vsel %vm158_vm0, %v5918_v47, 0.0  ;;  %4870 = vmatpush3.bf16.msra.mxu0 %v4867_v42 }
0x1bd2   :  { %3987 = vadd.xlane.f32.xlu1 %v3986_v50  ;;  %p5218_p9 = por %p5217_p8, %p5216_p7 }
0x1bd4   :  { %p5219_p10 = pnand %p5218_p9, %p5212_p6 }
0x1c5e   :  { %v3991_v53 = vpop.xlane.xlu0 %3990 }
0x1c5f   :  { %v3993_v41 = vmul.f32 0.03125, %v3991_v53  ;;  %v3988_v0 = vpop.xlane.xlu1 %3987 }
0x1c60   :  { %v3992_v57 = vmul.f32 0.03125, %v3988_v0  ;;  %v4326_v0 = vld [vmem:[%s5999_s11] ss:$0 sm:$0xff] }
0x1c61   :  { %v5925_v58 = vsub.f32 %v5915_v46, %v3993_v41 }
0x1c62   :  { %v3994_v48 = vsub.f32 %v5918_v47, %v3992_v57 }
0x1c63   :  { %v3997_v60 = vmul.f32 %v5925_v58, %v5925_v58  ;;  %v4025_v11 = vmul.f32 %v4023_v1, %v5925_v58 }
0x1c64   :  { %v3996_v15 = vmul.f32 %v3994_v48, %v3994_v48  ;;  %v4024_v32 = vmul.f32 %v4023_v1, %v3994_v48 }
0x1c65   :  { %v4001_v61 = vsel %vm158_vm0, %v3997_v60, 0.0 }
0x1c66   :  { %v3998_v49 = vsel %vm158_vm0, %v3996_v15, 0.0 }
0x1c67   :  { %3999 = vadd.xlane.f32.xlu0 %v3998_v49 }
0x1c6b   :  { %4002 = vadd.xlane.f32.xlu0 %v4001_v61 }
0x1cf4   :  { %v4000_v16 = vpop.xlane.xlu0 %3999 }
0x1cf5   :  { %v4004_v20 = vmul.f32 0.032258064, %v4000_v16 }
0x1cf7   :  { %5069 = vrsqrt.f32 %v4004_v20  ;;  %vm4008_vm13 = vcmp.eq.f32.partialorder %v4004_v20, inf  ;;  %v4011_v52 = vand.u32 2147483648, %v4004_v20  ;;  %vm4010_vm14 = vcmp.eq.f32.partialorder %v4004_v20, 0.0 }
0x1cf8   :  { %v4003_v56 = vpop.xlane.xlu0 %4002 }
0x1cf9   :  { %v4005_v18 = vmul.f32 0.032258064, %v4003_v56 }
0x1cfb   :  { %5071 = vrsqrt.f32 %v4005_v18  ;;  %vm4015_vm15 = vcmp.eq.f32.partialorder %v4005_v18, inf  ;;  %v4018_v27 = vand.u32 2147483648, %v4005_v18  ;;  %vm4017_vm1 = vcmp.eq.f32.partialorder %v4005_v18, 0.0 }
0x1d01   :  { %v5070_v24 = vpop.eup %5069 }
0x1d02   :  { %v4007_v63 = vmul.f32 %v5070_v24, %v4004_v20 }
0x1d04   :  { %v4009_v4 = vsel %vm4008_vm13, %v4004_v20, %v4007_v63 }
0x1d05   :  { %v5072_v6 = vpop.eup %5071  ;;  %v4012_v10 = vsel %vm4010_vm14, %v4011_v52, %v4009_v4 }
0x1d06   :  { %v4014_v25 = vmul.f32 %v5072_v6, %v4005_v18  ;;  %v4026_v26 = vadd.f32 1e-06, %v4012_v10 }
0x1d08   :  { %v4016_v28 = vsel %vm4015_vm15, %v4005_v18, %v4014_v25  ;;  %5073 = vrcp.f32 %v4026_v26 }
0x1d09   :  { %v4019_v31 = vsel %vm4017_vm1, %v4018_v27, %v4016_v28 }
0x1d0a   :  { %v4027_v62 = vadd.f32 1e-06, %v4019_v31 }
0x1d0c   :  { %5075 = vrcp.f32 %v4027_v62 }
0x1d12   :  { %v5074_v34 = vpop.eup %5073 }
0x1d13   :  { %v4029_v3 = vmul.f32 %v5074_v34, %v4024_v32 }
0x1d15   :  { %v4036_v35 = vadd.f32 %v4035_v33, %v4029_v3 }
0x1d16   :  { %v5076_v37 = vpop.eup %5075 }
0x1d17   :  { %v4031_v39 = vmul.f32 %v5076_v37, %v4025_v11  ;;  %4745 = vmatprep.mubr.msk.f32.mxu1 %vm158_vm0, %v4036_v35 }
0x1d19   :  { %v4037_v30 = vadd.f32 %v4035_v33, %v4031_v39 }
0x1d1b   :  { %4746 = vmatmul.mubr.msk.f32.vlgmr.msra.gmra.mrb[44].mxu1 %vm158_vm0, %v4037_v30 }
0x1dee   :  { %v4747_v43 = vpop.f32.mrb[44].mxu1 }
0x1def   :  { %v4122_v44 = vadd.f32 %v4747_v43, %v4323_v54  ;;  %v4116_v9 = vpop.f32.mrb[45].mxu1 }
0x1df0   :  { %v4117_v50 = vadd.f32 %v4323_v54, %v4116_v9 }
0x1df1   :  { %v4126_v41 = vmax.f32 %v4122_v44, 0.0 }
0x1df2   :  { %v4125_v53 = vmax.f32 %v4117_v50, 0.0 }
0x1df4   :  { %4764 = vmatprep.mubr.msk.f32.mxu0 %vm4133_vm2, %v4125_v53 }
0x1df5   :  { %4765 = vmatmul.mubr.msk.f32.vlgmr.msra.gmra.mrb[32].mxu0 %vm4133_vm2, %v4126_v41 }
0x1ec8   :  { %v4766_v57 = vpop.f32.mrb[32].mxu0 }
0x1ec9   :  { %v4212_v58 = vadd.f32 %v4766_v57, %v4326_v0  ;;  %v4206_v48 = vpop.f32.mrb[33].mxu0 }
0x1eca   :  { %v4207_v15 = vadd.f32 %v4326_v0, %v4206_v48 }
0x1ecb   :  { %v4216_v49 = vadd.f32 %v4212_v58, %v5915_v46 }
0x1ecc   :  { %v4215_v60 = vadd.f32 %v4207_v15, %v5918_v47 }
0x1ecd   :  { %4218 = vst.msk [vmem:[#allocation13 + $0x8] sm:$0xff] %vm158_vm0, %v4216_v49 }
0x1ece   :  { %4217 = vst.msk [vmem:[#allocation13] sm:$0xff] %vm158_vm0, %v4215_v60 }
0x1ecf   :  { %5222 = shalt.err (!%p5219_p10)
}
0x1ed0   :  { %s5223_s8 = scalar_lea.hbm %s6000_s12, 256 }
0x1ed1   :  { %p5224_p11 = scmp.ne.s32.totalorder %s6000_s12, %s5223_s8  ;;  %p5227_p12 = scmp.lt.u32.totalorder %s5223_s8, %s6000_s12 }
0x1ed3   :  { %p5229_p13 = pnand %p5227_p12, %p5224_p11 }
0x1ed5   :  { %5232 = shalt.err (!%p5229_p13)
}
0x1ed6   :  { %4230 = dma.vmem_to_hbm [thread:$0]  %s4225_s25, 256, %s6000_s12, [#allocation4], %s5244_s13, %s5244_s13, %s5245_s14  }
0x1ed7   :  { %5241 = dma.done.wait [#allocation4], 256  }
0x1ed8   :  { %5242 = vsyncadd [#allocation4], 4294967040 }
0x1ed9   :  { %4234 = vsyncpa [#allocation3], 1 }
0x1eda   :  { %4235 = vsyncpa [#allocation6], 1 }
0x1edb   :  { %4236 = vsyncpa [#allocation9], 1 }
0x1edc   :  { %4237 = vsyncpa [#allocation12], 1 }
0x1edd   :  { %4238 = vsyncpa [#allocation4], 1 }

</bundles_post_ra>
